<compile_context>
chip_gen: v7x
topology: tpu7x:2x2x1
jax: 0.10.0
libtpu: 0.0.40
codegen_flags: <defaults>
</compile_context>

<pallas_src>
import functools

import jax
import jax.numpy as jnp
from jax.experimental import pallas as pl
from jax.experimental.pallas import tpu as pltpu

BN_EPS = 1e-5
LANE = 128


def _vmem_limit_bytes():
    # v7x has 64 MiB VMEM per TensorCore (128 MiB on v5e/v6e): derive the scoped
    # limit from the hardware instead of hard-coding it.
    try:
        cap = pltpu.get_tpu_info().vmem_capacity_bytes
        return int(max(32 * 1024 * 1024, min(64 * 1024 * 1024, cap * 5 // 8)))
    except Exception:
        return 48 * 1024 * 1024


VMEM_LIMIT = _vmem_limit_bytes()


def _round_up(x, m):
    return (x + m - 1) // m * m


_TAPS3 = tuple((kh, kw) for kh in range(3) for kw in range(3))


# ---------------------------------------------------------------------------
# Pass A (generic): folded multi-tap conv (single MXU matmul) + per-image stats
# ---------------------------------------------------------------------------
def _conv_stats_kernel(taps, ho, wo, ct, x_ref, w_ref, y_ref, stats_ref, v_ref):
    # x_ref:     (1, Ht, Wt, Ct)  f32   pre-padded / pre-strided input tile
    # w_ref:     (T*Ct, Cp)       bf16  folded tap weights (K axis = taps x Cin)
    # y_ref:     (1, Ho*Wo, Cp)   bf16  conv output
    # stats_ref: (1, 2, Cp)       f32   per-image (sum, sum of squares)
    # v_ref:     (Ho*Wo, T*Ct)    bf16  scratch: concatenated tap views (K axis)
    x = x_ref[0]                                             # (Ht, Wt, Ct) f32
    for t, (dh, dw) in enumerate(taps):
        v = x[dh:dh + ho, dw:dw + wo, :].reshape(ho * wo, ct)
        v_ref[:, t * ct:(t + 1) * ct] = v.astype(jnp.bfloat16)
    acc = jnp.dot(v_ref[...], w_ref[...], preferred_element_type=jnp.float32)
    y_ref[0] = acc.astype(y_ref.dtype)
    stats_ref[0] = jnp.concatenate(
        [jnp.sum(acc, axis=0, keepdims=True),
         jnp.sum(acc * acc, axis=0, keepdims=True)], axis=0)


def conv_stats(x_prep, w_mat, taps, ho, wo):
    n, ht, wt, ct = x_prep.shape
    k, cp = w_mat.shape
    kernel = functools.partial(_conv_stats_kernel, tuple(taps), ho, wo, ct)
    return pl.pallas_call(
        kernel,
        grid=(n,),
        in_specs=[
            pl.BlockSpec((1, ht, wt, ct), lambda i: (i, 0, 0, 0)),
            pl.BlockSpec((k, cp), lambda i: (0, 0)),
        ],
        out_specs=[
            pl.BlockSpec((1, ho * wo, cp), lambda i: (i, 0, 0)),
            pl.BlockSpec((1, 2, cp), lambda i: (i, 0, 0)),
        ],
        out_shape=[
            jax.ShapeDtypeStruct((n, ho * wo, cp), jnp.bfloat16),
            jax.ShapeDtypeStruct((n, 2, cp), jnp.float32),
        ],
        scratch_shapes=[pltpu.VMEM((ho * wo, k), jnp.bfloat16)],
        compiler_params=pltpu.CompilerParams(
            dimension_semantics=("parallel",),
            vmem_limit_bytes=VMEM_LIMIT),
    )(x_prep, w_mat)


# ---------------------------------------------------------------------------
# Pass A2: BN1-apply + ReLU + halo pad fused into conv2 (folded matmul) + stats
# ---------------------------------------------------------------------------
def _bn_relu_conv_stats_kernel(ho, wo, cp, y1_ref, sc_ref, sh_ref, w_ref,
                               y_ref, stats_ref, xpad_ref, v_ref):
    # y1_ref: (1, Ho*Wo, Cp) bf16 conv1 output; sc/sh: (1, Cp) f32 BN1 scale/shift
    # w_ref:  (9*Cp, Cp) bf16 folded conv2 weights
    # xpad_ref: (Ho+2, Wo+2, Cp) f32 scratch; v_ref: (Ho*Wo, 9*Cp) bf16 scratch
    a = jnp.maximum(
        y1_ref[0].astype(jnp.float32) * sc_ref[...] + sh_ref[...], 0.0)
    xpad_ref[...] = jnp.zeros_like(xpad_ref)
    xpad_ref[1:1 + ho, 1:1 + wo, :] = a.reshape(ho, wo, cp)
    for t, (dh, dw) in enumerate(_TAPS3):
        v = xpad_ref[dh:dh + ho, dw:dw + wo, :]
        v_ref[:, t * cp:(t + 1) * cp] = (
            v.reshape(ho * wo, cp).astype(jnp.bfloat16))
    acc = jnp.dot(v_ref[...], w_ref[...], preferred_element_type=jnp.float32)
    y_ref[0] = acc.astype(y_ref.dtype)
    stats_ref[0] = jnp.concatenate(
        [jnp.sum(acc, axis=0, keepdims=True),
         jnp.sum(acc * acc, axis=0, keepdims=True)], axis=0)


def bn_relu_conv_stats(y1, scale1, shift1, w_mat, ho, wo):
    n, hw, cp = y1.shape
    k = w_mat.shape[0]
    kernel = functools.partial(_bn_relu_conv_stats_kernel, ho, wo, cp)
    return pl.pallas_call(
        kernel,
        grid=(n,),
        in_specs=[
            pl.BlockSpec((1, hw, cp), lambda i: (i, 0, 0)),
            pl.BlockSpec((1, cp), lambda i: (0, 0)),
            pl.BlockSpec((1, cp), lambda i: (0, 0)),
            pl.BlockSpec((k, cp), lambda i: (0, 0)),
        ],
        out_specs=[
            pl.BlockSpec((1, hw, cp), lambda i: (i, 0, 0)),
            pl.BlockSpec((1, 2, cp), lambda i: (i, 0, 0)),
        ],
        out_shape=[
            jax.ShapeDtypeStruct((n, hw, cp), jnp.bfloat16),
            jax.ShapeDtypeStruct((n, 2, cp), jnp.float32),
        ],
        scratch_shapes=[
            pltpu.VMEM((ho + 2, wo + 2, cp), jnp.float32),
            pltpu.VMEM((hw, k), jnp.bfloat16),
        ],
        compiler_params=pltpu.CompilerParams(
            dimension_semantics=("parallel",),
            vmem_limit_bytes=VMEM_LIMIT),
    )(y1, scale1, shift1, w_mat)


# ---------------------------------------------------------------------------
# Pass B: streaming epilogue  y2*scale2+shift2 (+ residual [* rscale + rshift]) , ReLU
# ---------------------------------------------------------------------------
def _epilogue_kernel(res_mode, cin_r, *refs):
    if res_mode == 2:                       # projection residual with its own BN
        y_ref, sc_ref, sh_ref, r_ref, rsc_ref, rsh_ref, o_ref = refs
        r = r_ref[0].astype(jnp.float32) * rsc_ref[...] + rsh_ref[...]
    else:                                   # raw identity residual (unpadded C)
        cp = refs[0].shape[-1]
        if cin_r == cp:
            y_ref, sc_ref, sh_ref, r_ref, o_ref = refs
            r = r_ref[0].astype(jnp.float32)
        else:
            y_ref, sc_ref, sh_ref, r_ref, o_ref, rpad_ref = refs
            rpad_ref[...] = jnp.zeros_like(rpad_ref)
            rpad_ref[:, :cin_r] = r_ref[0].astype(jnp.float32)
            r = rpad_ref[...]
    y = y_ref[0].astype(jnp.float32) * sc_ref[...] + sh_ref[...] + r
    o_ref[0] = jnp.maximum(y, 0.0).astype(o_ref.dtype)


def bn_add_relu(y2, scale2, shift2, residual, rscale=None, rshift=None,
                out_dtype=jnp.float32):
    n, hw, cp = y2.shape
    cin_r = residual.shape[-1]
    tb = hw
    for cand in (2048, 1024, 512, 256):
        if hw % cand == 0:
            tb = cand
            break
    res_mode = 2 if rscale is not None else 1

    tile = pl.BlockSpec((1, tb, cp), lambda i, j: (i, j, 0))
    rtile = pl.BlockSpec((1, tb, cin_r), lambda i, j: (i, j, 0))
    vec = pl.BlockSpec((1, cp), lambda i, j: (0, 0))

    inputs = [y2, scale2, shift2, residual]
    in_specs = [tile, vec, vec, rtile]
    scratch = []
    if res_mode == 2:
        inputs += [rscale, rshift]
        in_specs += [vec, vec]
    elif cin_r < cp:
        scratch = [pltpu.VMEM((tb, cp), jnp.float32)]

    kernel = functools.partial(_epilogue_kernel, res_mode, cin_r)
    return pl.pallas_call(
        kernel,
        grid=(n, hw // tb),
        in_specs=in_specs,
        out_specs=tile,
        out_shape=jax.ShapeDtypeStruct((n, hw, cp), out_dtype),
        scratch_shapes=scratch,
        compiler_params=pltpu.CompilerParams(
            dimension_semantics=("parallel", "parallel"),
            vmem_limit_bytes=VMEM_LIMIT),
    )(*inputs)


# ---------------------------------------------------------------------------
# Weight / input preparation glue (pure data movement in the wrapper)
# ---------------------------------------------------------------------------
def _pad_vec(v, cp):
    return jnp.pad(v, ((0, 0), (0, cp - v.shape[1])))


def conv3x3_weight(w_oihw, cin_pad, cout_pad):
    """(Cout, Cin, 3, 3) -> folded (9*cin_pad, cout_pad) bf16, tap-major rows."""
    cout, cin = w_oihw.shape[:2]
    mats = [jnp.pad(jnp.transpose(w_oihw[:, :, kh, kw], (1, 0)),
                    ((0, cin_pad - cin), (0, cout_pad - cout)))
            for kh, kw in _TAPS3]
    return jnp.concatenate(mats, axis=0).astype(jnp.bfloat16), _TAPS3


def conv3x3_s2_weight(w_oihw, cout_pad):
    """stride-2 3x3 conv == stride-1 2x2-tap conv over space_to_depth(2) input."""
    cout, cin = w_oihw.shape[:2]
    taps = ((0, 0), (0, 1), (1, 0), (1, 1))
    mats = []
    for dh, dw in taps:
        for a in range(2):
            for b in range(2):
                kh, kw = 2 * dh + a, 2 * dw + b
                if kh < 3 and kw < 3:
                    mats.append(jnp.transpose(w_oihw[:, :, kh, kw], (1, 0)))
                else:
                    mats.append(jnp.zeros((cin, cout), jnp.float32))
    wmat = jnp.concatenate(mats, axis=0)                       # (16*cin, cout)
    wmat = jnp.pad(wmat, ((0, 0), (0, cout_pad - cout)))
    return wmat.astype(jnp.bfloat16), taps


def conv1x1_weight(w_oihw, cout_pad):
    cout, cin = w_oihw.shape[:2]
    wmat = jnp.pad(jnp.transpose(w_oihw[:, :, 0, 0], (1, 0)),
                   ((0, 0), (0, cout_pad - cout)))
    return wmat.astype(jnp.bfloat16), ((0, 0),)


def space_to_depth2(x):
    n, hp, wp, c = x.shape
    x = x.reshape(n, hp // 2, 2, wp // 2, 2, c)
    x = jnp.transpose(x, (0, 1, 3, 2, 4, 5))
    return x.reshape(n, hp // 2, wp // 2, 4 * c)


def _bn_scale_shift(stats, gamma_p, beta_p, m_total):
    """Fold full-batch BN stats + gamma/beta into (scale, shift) (1, Cp) f32."""
    s = jnp.sum(stats, axis=0)                                 # (2, Cp)
    inv_m = 1.0 / float(m_total)
    mean = s[0:1] * inv_m
    var = jnp.maximum(s[1:2] * inv_m - mean * mean, 0.0)
    scale = gamma_p * jax.lax.rsqrt(var + BN_EPS)
    shift = beta_p - mean * scale
    return scale, shift


# ---------------------------------------------------------------------------
# ResidualBlock forward (PyTorch-facing NCHW I/O)
# ---------------------------------------------------------------------------
def residual_block_forward(x_nchw, params, stride=1):
    x = jnp.transpose(x_nchw, (0, 2, 3, 1)).astype(jnp.float32)   # NHWC
    n, h, w, cin = x.shape
    cout = params["conv1_w"].shape[0]
    cp = _round_up(cout, LANE)             # lane-dense padded channel width
    need_down = (stride != 1) or (cin != cout)

    # ---- conv1 -> y1 (bf16) + BN1 batch stats --------------------------------
    xp = jnp.pad(x, ((0, 0), (1, 1), (1, 1), (0, 0)))
    if stride == 1:
        w1, taps1 = conv3x3_weight(params["conv1_w"], cin, cp)
        x1, ho, wo = xp, h, w
    else:
        assert stride == 2 and h % 2 == 0 and w % 2 == 0, \
            "stride-2 path assumes even H, W"
        w1, taps1 = conv3x3_s2_weight(params["conv1_w"], cp)
        x1, ho, wo = space_to_depth2(xp), h // 2, w // 2
    y1, st1 = conv_stats(x1, w1, taps1, ho, wo)
    m = n * ho * wo                        # BN statistics count (full batch)
    sc1, sh1 = _bn_scale_shift(st1, _pad_vec(params["bn1_g"], cp),
                               _pad_vec(params["bn1_b"], cp), m)

    # ---- BN1+ReLU+pad fused into conv2 -> y2 (bf16) + BN2 batch stats --------
    w2, _ = conv3x3_weight(params["conv2_w"], cp, cp)
    y2, st2 = bn_relu_conv_stats(y1, sc1, sh1, w2, ho, wo)
    sc2, sh2 = _bn_scale_shift(st2, _pad_vec(params["bn2_g"], cp),
                               _pad_vec(params["bn2_b"], cp), m)

    # ---- identity / projection path + fused epilogue -------------------------
    if need_down:
        xs = x[:, ::stride, ::stride, :]                       # (n, ho, wo, cin)
        wd, tapsd = conv1x1_weight(params["down_w"], cp)
        res, std = conv_stats(xs, wd, tapsd, ho, wo)
        rsc, rsh = _bn_scale_shift(std, _pad_vec(params["down_bn_g"], cp),
                                   _pad_vec(params["down_bn_b"], cp), m)
        out = bn_add_relu(y2, sc2, sh2, res, rsc, rsh)
    else:
        res = x.reshape(n, h * w, cin)     # raw f32 identity, unpadded channels
        out = bn_add_relu(y2, sc2, sh2, res)

    out = out.reshape(n, ho, wo, cp)[..., :cout]
    return jnp.transpose(out, (0, 3, 1, 2))                    # NCHW


# ---------------------------------------------------------------------------
# Deterministic parameter init + pure-JAX f32 reference for verification
# ---------------------------------------------------------------------------
def init_params(key, cin, cout, stride):
    ks = jax.random.split(key, 10)

    def conv_w(k, co, ci, kh, kw):
        fan_in = ci * kh * kw
        return jax.random.normal(k, (co, ci, kh, kw), jnp.float32) / jnp.sqrt(fan_in)

    def vec(k, co, scale=0.1):
        return scale * jax.random.normal(k, (1, co), jnp.float32)

    p = {
        "conv1_w": conv_w(ks[0], cout, cin, 3, 3),
        "conv1_b": vec(ks[1], cout),
        "bn1_g": 1.0 + vec(ks[2], cout),
        "bn1_b": vec(ks[3], cout),
        "conv2_w": conv_w(ks[4], cout, cout, 3, 3),
        "conv2_b": vec(ks[5], cout),
        "bn2_g": 1.0 + vec(ks[6], cout),
        "bn2_b": vec(ks[7], cout),
    }
    if stride != 1 or cin != cout:
        p["down_w"] = conv_w(ks[8], cout, cin, 1, 1)
        p["down_b"] = vec(ks[9], cout)
        p["down_bn_g"] = jnp.ones((1, cout), jnp.float32)
        p["down_bn_b"] = jnp.zeros((1, cout), jnp.float32)
    return p


def ref_forward(x_nchw, params, stride=1):
    # Reference keeps the conv bias (as in the PyTorch module); train-mode BN
    # cancels it, so it must match the bias-free kernel path.
    def conv(x, w, b, s, pad):
        y = jax.lax.conv_general_dilated(
            x, w, (s, s), ((pad, pad), (pad, pad)),
            dimension_numbers=("NCHW", "OIHW", "NCHW"))
        return y + b.reshape(1, -1, 1, 1)

    def bn(y, g, bt):
        mean = y.mean(axis=(0, 2, 3), keepdims=True)
        var = jnp.mean(jnp.square(y - mean), axis=(0, 2, 3), keepdims=True)
        return ((y - mean) * jax.lax.rsqrt(var + BN_EPS)
                * g.reshape(1, -1, 1, 1) + bt.reshape(1, -1, 1, 1))

    cin = x_nchw.shape[1]
    cout = params["conv1_w"].shape[0]
    out = jax.nn.relu(bn(conv(x_nchw, params["conv1_w"], params["conv1_b"], stride, 1),
                         params["bn1_g"], params["bn1_b"]))
    out = bn(conv(out, params["conv2_w"], params["conv2_b"], 1, 1),
             params["bn2_g"], params["bn2_b"])
    if stride != 1 or cin != cout:
        identity = bn(conv(x_nchw, params["down_w"], params["down_b"], stride, 0),
                      params["down_bn_g"], params["down_bn_b"])
    else:
        identity = x_nchw
    return jax.nn.relu(out + identity)


if __name__ == "__main__":
    key = jax.random.PRNGKey(0)
    kx, kp1, kp2 = jax.random.split(key, 3)
    x = jax.random.normal(kx, (2, 4, 16, 16), jnp.float32)   # NCHW, like PyTorch

    ok = True
    TOL = 1e-1   # bf16 MXU inputs / bf16 activation writeback vs f32 XLA reference

    # Config A: identity skip (in_planes == out_planes == 4, stride = 1)
    pa = init_params(kp1, 4, 4, 1)
    out_a = jax.block_until_ready(residual_block_forward(x, pa, stride=1))
    ref_a = ref_forward(x, pa, stride=1)
    ok &= out_a.shape == (2, 4, 16, 16)
    ok &= bool(jnp.max(jnp.abs(out_a - ref_a)) < TOL)

    # Config B: projection skip (4 -> 8 channels, stride = 2)
    pb = init_params(kp2, 4, 8, 2)
    out_b = jax.block_until_ready(residual_block_forward(x, pb, stride=2))
    ref_b = ref_forward(x, pb, stride=2)
    ok &= out_b.shape == (2, 8, 8, 8)
    ok &= bool(jnp.max(jnp.abs(out_b - ref_b)) < TOL)

    if ok:
        print("KERNEL_OK")
    else:
        print("KERNEL_MISMATCH")
</pallas_src>

<mosaic_0001>
module attributes {stable_mosaic.version = 11 : i64} {
  func.func @_conv_stats_kernel(%arg0: i32, %arg1: memref<1x18x18x4xf32, #tpu.memory_space<vmem>>, %arg2: memref<36x128xbf16, #tpu.memory_space<vmem>>, %arg3: memref<1x256x128xbf16, #tpu.memory_space<vmem>>, %arg4: memref<1x2x128xf32, #tpu.memory_space<vmem>>, %arg5: memref<256x36xbf16, #tpu.memory_space<vmem>>) attributes {dimension_semantics = [#tpu.dimension_semantics<parallel>], iteration_bounds = array<i64: 2>, scalar_prefetch = 0 : i64, scratch_operands = 1 : i64, tpu.core_type = #tpu.core_type<tc>, window_params = [{transform_indices = @transform_0, window_bounds = array<i64: 1, 18, 18, 4>}, {pipeline_mode = #tpu.pipeline_mode<synchronous>, transform_indices = @transform_1, window_bounds = array<i64: 36, 128>}, {transform_indices = @transform_2, window_bounds = array<i64: 1, 256, 128>}, {transform_indices = @transform_3, window_bounds = array<i64: 1, 2, 128>}]} {
    %c0 = arith.constant 0 : index
    %c0_0 = arith.constant 0 : index
    %c0_1 = arith.constant 0 : index
    %c0_2 = arith.constant 0 : index
    %0 = vector.load %arg1[%c0, %c0_0, %c0_1, %c0_2] : memref<1x18x18x4xf32, #tpu.memory_space<vmem>>, vector<1x18x18x4xf32>
    %1 = vector.shape_cast %0 : vector<1x18x18x4xf32> to vector<18x18x4xf32>
    %2 = vector.extract_strided_slice %1 {offsets = [0, 0, 0], sizes = [16, 16, 4], strides = [1, 1, 1]} : vector<18x18x4xf32> to vector<16x16x4xf32>
    %3 = vector.shape_cast %2 : vector<16x16x4xf32> to vector<256x4xf32>
    %4 = arith.truncf %3 : vector<256x4xf32> to vector<256x4xbf16>
    %c0_3 = arith.constant 0 : index
    %c0_4 = arith.constant 0 : index
    %5 = vector.load %arg5[%c0_3, %c0_4] : memref<256x36xbf16, #tpu.memory_space<vmem>>, vector<256x4xbf16>
    tpu.vector_store %arg5[%c0_3, %c0_4], %4 {strides = array<i32>} : memref<256x36xbf16, #tpu.memory_space<vmem>>, vector<256x4xbf16>,
    %6 = vector.extract_strided_slice %1 {offsets = [0, 1, 0], sizes = [16, 16, 4], strides = [1, 1, 1]} : vector<18x18x4xf32> to vector<16x16x4xf32>
    %7 = vector.shape_cast %6 : vector<16x16x4xf32> to vector<256x4xf32>
    %8 = arith.truncf %7 : vector<256x4xf32> to vector<256x4xbf16>
    %c0_5 = arith.constant 0 : index
    %c4 = arith.constant 4 : index
    %9 = vector.load %arg5[%c0_5, %c4] : memref<256x36xbf16, #tpu.memory_space<vmem>>, vector<256x4xbf16>
    tpu.vector_store %arg5[%c0_5, %c4], %8 {strides = array<i32>} : memref<256x36xbf16, #tpu.memory_space<vmem>>, vector<256x4xbf16>,
    %10 = vector.extract_strided_slice %1 {offsets = [0, 2, 0], sizes = [16, 16, 4], strides = [1, 1, 1]} : vector<18x18x4xf32> to vector<16x16x4xf32>
    %11 = vector.shape_cast %10 : vector<16x16x4xf32> to vector<256x4xf32>
    %12 = arith.truncf %11 : vector<256x4xf32> to vector<256x4xbf16>
    %c0_6 = arith.constant 0 : index
    %c8 = arith.constant 8 : index
    %13 = vector.load %arg5[%c0_6, %c8] : memref<256x36xbf16, #tpu.memory_space<vmem>>, vector<256x4xbf16>
    tpu.vector_store %arg5[%c0_6, %c8], %12 {strides = array<i32>} : memref<256x36xbf16, #tpu.memory_space<vmem>>, vector<256x4xbf16>,
    %14 = vector.extract_strided_slice %1 {offsets = [1, 0, 0], sizes = [16, 16, 4], strides = [1, 1, 1]} : vector<18x18x4xf32> to vector<16x16x4xf32>
    %15 = vector.shape_cast %14 : vector<16x16x4xf32> to vector<256x4xf32>
    %16 = arith.truncf %15 : vector<256x4xf32> to vector<256x4xbf16>
    %c0_7 = arith.constant 0 : index
    %c12 = arith.constant 12 : index
    %17 = vector.load %arg5[%c0_7, %c12] : memref<256x36xbf16, #tpu.memory_space<vmem>>, vector<256x4xbf16>
    tpu.vector_store %arg5[%c0_7, %c12], %16 {strides = array<i32>} : memref<256x36xbf16, #tpu.memory_space<vmem>>, vector<256x4xbf16>,
    %18 = vector.extract_strided_slice %1 {offsets = [1, 1, 0], sizes = [16, 16, 4], strides = [1, 1, 1]} : vector<18x18x4xf32> to vector<16x16x4xf32>
    %19 = vector.shape_cast %18 : vector<16x16x4xf32> to vector<256x4xf32>
    %20 = arith.truncf %19 : vector<256x4xf32> to vector<256x4xbf16>
    %c0_8 = arith.constant 0 : index
    %c16 = arith.constant 16 : index
    %21 = vector.load %arg5[%c0_8, %c16] : memref<256x36xbf16, #tpu.memory_space<vmem>>, vector<256x4xbf16>
    tpu.vector_store %arg5[%c0_8, %c16], %20 {strides = array<i32>} : memref<256x36xbf16, #tpu.memory_space<vmem>>, vector<256x4xbf16>,
    %22 = vector.extract_strided_slice %1 {offsets = [1, 2, 0], sizes = [16, 16, 4], strides = [1, 1, 1]} : vector<18x18x4xf32> to vector<16x16x4xf32>
    %23 = vector.shape_cast %22 : vector<16x16x4xf32> to vector<256x4xf32>
    %24 = arith.truncf %23 : vector<256x4xf32> to vector<256x4xbf16>
    %c0_9 = arith.constant 0 : index
    %c20 = arith.constant 20 : index
    %25 = vector.load %arg5[%c0_9, %c20] : memref<256x36xbf16, #tpu.memory_space<vmem>>, vector<256x4xbf16>
    tpu.vector_store %arg5[%c0_9, %c20], %24 {strides = array<i32>} : memref<256x36xbf16, #tpu.memory_space<vmem>>, vector<256x4xbf16>,
    %26 = vector.extract_strided_slice %1 {offsets = [2, 0, 0], sizes = [16, 16, 4], strides = [1, 1, 1]} : vector<18x18x4xf32> to vector<16x16x4xf32>
    %27 = vector.shape_cast %26 : vector<16x16x4xf32> to vector<256x4xf32>
    %28 = arith.truncf %27 : vector<256x4xf32> to vector<256x4xbf16>
    %c0_10 = arith.constant 0 : index
    %c24 = arith.constant 24 : index
    %29 = vector.load %arg5[%c0_10, %c24] : memref<256x36xbf16, #tpu.memory_space<vmem>>, vector<256x4xbf16>
    tpu.vector_store %arg5[%c0_10, %c24], %28 {strides = array<i32>} : memref<256x36xbf16, #tpu.memory_space<vmem>>, vector<256x4xbf16>,
    %30 = vector.extract_strided_slice %1 {offsets = [2, 1, 0], sizes = [16, 16, 4], strides = [1, 1, 1]} : vector<18x18x4xf32> to vector<16x16x4xf32>
    %31 = vector.shape_cast %30 : vector<16x16x4xf32> to vector<256x4xf32>
    %32 = arith.truncf %31 : vector<256x4xf32> to vector<256x4xbf16>
    %c0_11 = arith.constant 0 : index
    %c28 = arith.constant 28 : index
    %33 = vector.load %arg5[%c0_11, %c28] : memref<256x36xbf16, #tpu.memory_space<vmem>>, vector<256x4xbf16>
    tpu.vector_store %arg5[%c0_11, %c28], %32 {strides = array<i32>} : memref<256x36xbf16, #tpu.memory_space<vmem>>, vector<256x4xbf16>,
    %34 = vector.extract_strided_slice %1 {offsets = [2, 2, 0], sizes = [16, 16, 4], strides = [1, 1, 1]} : vector<18x18x4xf32> to vector<16x16x4xf32>
    %35 = vector.shape_cast %34 : vector<16x16x4xf32> to vector<256x4xf32>
    %36 = arith.truncf %35 : vector<256x4xf32> to vector<256x4xbf16>
    %c0_12 = arith.constant 0 : index
    %c32 = arith.constant 32 : index
    %37 = vector.load %arg5[%c0_12, %c32] : memref<256x36xbf16, #tpu.memory_space<vmem>>, vector<256x4xbf16>
    tpu.vector_store %arg5[%c0_12, %c32], %36 {strides = array<i32>} : memref<256x36xbf16, #tpu.memory_space<vmem>>, vector<256x4xbf16>,
    %c0_13 = arith.constant 0 : index
    %c0_14 = arith.constant 0 : index
    %38 = vector.load %arg5[%c0_13, %c0_14] : memref<256x36xbf16, #tpu.memory_space<vmem>>, vector<256x36xbf16>
    %c0_15 = arith.constant 0 : index
    %c0_16 = arith.constant 0 : index
    %39 = vector.load %arg2[%c0_15, %c0_16] : memref<36x128xbf16, #tpu.memory_space<vmem>>, vector<36x128xbf16>
    %cst = arith.constant dense<0.000000e+00> : vector<256x128xf32>
    %40 = tpu.matmul %38, %39, %cst {dimension_numbers = #tpu.dot_dimension_numbers<[1], [0], [0], [1], [0, 0, 1, 1], [], []>} : vector<256x36xbf16>, vector<36x128xbf16>, vector<256x128xf32> -> vector<256x128xf32>
    %41 = arith.truncf %40 : vector<256x128xf32> to vector<256x128xbf16>
    %c0_17 = arith.constant 0 : index
    %c0_18 = arith.constant 0 : index
    %c0_19 = arith.constant 0 : index
    %42 = vector.load %arg3[%c0_17, %c0_18, %c0_19] : memref<1x256x128xbf16, #tpu.memory_space<vmem>>, vector<1x256x128xbf16>
    %43 = vector.shape_cast %42 : vector<1x256x128xbf16> to vector<256x128xbf16>
    %44 = vector.shape_cast %41 : vector<256x128xbf16> to vector<1x256x128xbf16>
    tpu.vector_store %arg3[%c0_17, %c0_18, %c0_19], %44 {strides = array<i32>} : memref<1x256x128xbf16, #tpu.memory_space<vmem>>, vector<1x256x128xbf16>,
    %cst_20 = arith.constant dense<0.000000e+00> : vector<128xf32>
    %45 = vector.multi_reduction <add>, %40, %cst_20 [0] : vector<256x128xf32> to vector<128xf32>
    %46 = vector.shape_cast %45 : vector<128xf32> to vector<1x128xf32>
    %47 = arith.mulf %40, %40 : vector<256x128xf32>
    %cst_21 = arith.constant dense<0.000000e+00> : vector<128xf32>
    %48 = vector.multi_reduction <add>, %47, %cst_21 [0] : vector<256x128xf32> to vector<128xf32>
    %49 = vector.shape_cast %48 : vector<128xf32> to vector<1x128xf32>
    %50 = tpu.concatenate %46, %49 in 0 : vector<1x128xf32>, vector<1x128xf32> -> vector<2x128xf32>
    %c0_22 = arith.constant 0 : index
    %c0_23 = arith.constant 0 : index
    %c0_24 = arith.constant 0 : index
    %51 = vector.load %arg4[%c0_22, %c0_23, %c0_24] : memref<1x2x128xf32, #tpu.memory_space<vmem>>, vector<1x2x128xf32>
    %52 = vector.shape_cast %51 : vector<1x2x128xf32> to vector<2x128xf32>
    %53 = vector.shape_cast %50 : vector<2x128xf32> to vector<1x2x128xf32>
    tpu.vector_store %arg4[%c0_22, %c0_23, %c0_24], %53 {strides = array<i32>} : memref<1x2x128xf32, #tpu.memory_space<vmem>>, vector<1x2x128xf32>,
    return
  }
  func.func @transform_0(%arg0: i32) -> (i32, i32, i32, i32) {
    %c0_i32 = arith.constant 0 : i32
    %c0_i32_0 = arith.constant 0 : i32
    %c0_i32_1 = arith.constant 0 : i32
    %c0_i32_2 = arith.constant 0 : i32
    return %arg0, %c0_i32, %c0_i32_0, %c0_i32_1 : i32, i32, i32, i32
  }
  func.func @transform_1(%arg0: i32) -> (i32, i32) {
    %c0_i32 = arith.constant 0 : i32
    %c0_i32_0 = arith.constant 0 : i32
    %c0_i32_1 = arith.constant 0 : i32
    return %c0_i32, %c0_i32_0 : i32, i32
  }
  func.func @transform_2(%arg0: i32) -> (i32, i32, i32) {
    %c0_i32 = arith.constant 0 : i32
    %c0_i32_0 = arith.constant 0 : i32
    %c0_i32_1 = arith.constant 0 : i32
    return %arg0, %c0_i32, %c0_i32_0 : i32, i32, i32
  }
  func.func @transform_3(%arg0: i32) -> (i32, i32, i32) {
    %c0_i32 = arith.constant 0 : i32
    %c0_i32_0 = arith.constant 0 : i32
    %c0_i32_1 = arith.constant 0 : i32
    return %arg0, %c0_i32, %c0_i32_0 : i32, i32, i32
  }
}

</mosaic_0001>

<bundles_post_ra>
// kernel: tpu_custom_call.1
= control target key start
LH: loop header
LB: loop body
LE: loop exit
PB: predicated region body
PF: predicated region fallthrough
CT: control target
= control target key end

     0   :  { %9 = vsyncpa [#allocation4], 0  ;;  %s3095_s0 = inlined_call_operand.vmem [shape: f32[2,18,18,4], index: 0, kind: input, shape index: {}]   ;;  %s3096_s1 = inlined_call_operand.vmem [shape: bf16[36,128], index: 1, kind: input, shape index: {}]   ;;  %s3097_s2 = inlined_call_operand.hbm [shape: bf16[2,256,128], index: 2, kind: output, shape index: {0}]   ;;  %s3098_s3 = inlined_call_operand.hbm [shape: f32[2,2,128], index: 3, kind: output, shape index: {1}]  }
   0x1   :  { %11 = vsyncpa [#allocation4 + $0x1], 0 }
   0x2   :  { %12 = vsyncpa [#allocation6], 0 }
   0x3   :  { %14 = vsyncpa [#allocation6 + $0x1], 0  ;;  %s2274_s12 = smov 0   ;;  %s2276_s13 = smov 0  }
   0x4   :  { %s2278_s14 = smov 0   ;;  %s2280_s15 = smov 0  }
   0x5 LB: > { %s2295_s16 = sadd.s32 4294967295, %s2241_s15   ;;  %s1832_s17 = sadd.s32 4294967294, %s2241_s15   ;;  %s2241_s15 = sphi %s2280_s15, %s3104_s15   ;;  %s2237_s14 = sphi %s2278_s14, %s3103_s14   ;;  %s2233_s13 = sphi %s2276_s13, %s3102_s13   ;;  %s2229_s12 = sphi %s2274_s12, %s3101_s12  }
   0x6   : > { %s2299_s18 = sadd.s32 1, %s2241_s15   ;;  %s74_s19 = sadd.s32 1, %s2237_s14 }
   0x7   : > { %s71_s20 = ssub.s32 %s2241_s15, %s2299_s18  ;;  %p84_p0 = scmp.ne.s32.totalorder %s2237_s14, %s2233_s13 }
   0x8   : > { %p72_p1 = scmp.eq.s32.totalorder %s71_s20, 0  ;;  %p85_p2 = scmp.eq.s32.totalorder %s2295_s16, 1 }
   0x9   : > { %p90_p3 = scmp.ne.s32.totalorder %s2233_s13, %s2229_s12  ;;  %p91_p4 = scmp.eq.s32.totalorder %s1832_s17, 1 }
   0xa   : > { %s2310_s21 = scalar_select %p72_p1, %s2237_s14, %s74_s19  }
   0xb   : > { %p2312_p5 = por %p85_p2, %p84_p0  ;;  %p2316_p6 = por %p91_p4, %p90_p3 }
   0xc   : > { %p1835_p7 = scmp.ge.s32.totalorder %s2241_s15, 1  ;;  %p146_p8 = scmp.lt.s32.totalorder %s2241_s15, 3 }
   0xe   : > { %p147_p9 = pnand %p1835_p7, %p146_p8 }
   0xf   : > { %p175_p10 = scmp.lt.s32.totalorder (!%p147_p9), %s2295_s16, 1  ;;  %vm251_vm0 = vcmask (!%p147_p9), 31744   ;;  %vm316_vm1 = vcmask (!%p147_p9), 1046528   ;;  %vm526_vm2 = vcmask (!%p147_p9), 1045504   ;;  %s2243_s29 = smov (!%p147_p9), 12   ;;  %v2144_v62 = vld [vmem:[%s3096_s1] sm:$0xff] (!%p147_p9)  }
  0x10   : > { %150 = sbr.rel (%p147_p9) target bundleno = 669 (0x29d), region = 28  ;;  %s2244_s30 = smov (!%p147_p9), 4   ;;  %2044 = vmatprep.subr.bf16.mxu0 (!%p147_p9), %v2144_v62  ;;  %2082 = vmatprep.subr.bf16.mxu1 (!%p147_p9), %v2144_v62  ;;  %vm1272_vm3 = vcmask (!%p147_p9), 1041408   ;;  %vm509_vm4 = vcmask (!%p147_p9), 64544   ;;  %vm719_vm5 = vcmask (!%p147_p9), 97344   ;;  %vm801_vm6 = vcmask (!%p147_p9), 130144  }
  0x11   : > { %s2245_s4 = smov (!%p147_p9), 8   ;;  %s2246_s5 = smov (!%p147_p9), 16   ;;  %2045 = vmatpush3.bf16.msra.mxu0 (!%p147_p9), %v2144_v62  ;;  %2085 = vmatpush3.bf16.msra.mxu1 (!%p147_p9), %v2144_v62  ;;  %vm878_vm7 = vcmask (!%p147_p9), 162944   ;;  %vm952_vm8 = vcmask (!%p147_p9), 195744   ;;  %vm1019_vm9 = vcmask (!%p147_p9), 228544   ;;  %vm1096_vm10 = vcmask (!%p147_p9), 261344  }
  0x12   : > { %s2247_s8 = smov (!%p147_p9), 20   ;;  %s2248_s11 = smov (!%p147_p9), 24   ;;  %vm1170_vm11 = vcmask (!%p147_p9), 294144   ;;  %vm1223_vm12 = vcmask (!%p147_p9), 293888  }
  0x13   : > { %s2249_s17 = smov (!%p147_p9), 28   ;;  %s2250_s19 = smov (!%p147_p9), 32  }
  0x14   : > { %s2251_s9 = smov (!%p147_p9), [#allocation3]  }
  0x15   : > { %s2151_s10 = sshll.u32 (!%p147_p9), %s2251_s9, 4  ;;  %s2152_s10 = int_to_ptr.vmem [resolvable:$false] %s2151_s10 }
  0x17   : > { %s176_s24 = scalar_select %p175_p10, %s2295_s16, 1 }
  0x19   : > { %s2090_s25 = smul.u32 432, %s176_s24 }
  0x1b   : > { %s2327_s28 = scalar_lea.vmem %s3095_s0, %s2090_s25  ;;  %s2986_s25 = sand.u32 1, %s2233_s13  }
  0x1c   : > { %v184_v0 = vld [vmem:[%s2327_s28 + $0x18] sm:$0xff]  ;;  %v185_v1 = vld [vmem:[%s2327_s28 + $0x20] sm:$0xff]  ;;  %v2332_v2 = vld [vmem:[%s2327_s28 + $0x30] sm:$0xff]  ;;  %s1836_s26 = sshll.u32 %s2986_s25, 7  ;;  %s1707_s7 = scalar_lea.sflag [#allocation4], %s2986_s25 }
  0x1d   : > { %v236_v3 = vpack.c.bf16 %v185_v1, %v184_v0  ;;  %v322_v4 = vrot.slane %v184_v0, 1  ;;  %v323_v5 = vrot.slane %v185_v1, 1  ;;  %v532_v6 = vrot.slane %v184_v0, 2  ;;  %v188_v7 = vld [vmem:[%s2327_s28 + $0x38] sm:$0xff]  ;;  %v2336_v8 = vld [vmem:[%s2327_s28] sm:$0xff]  ;;  %v2339_v9 = vld [vmem:[%s2327_s28 + $0x8] sm:$0xff] }
  0x1e   : > { %v533_v10 = vrot.slane %v185_v1, 2  ;;  %v2342_v11 = vpack.c.bf16 %v188_v7, %v2332_v2  ;;  %v183_v12 = vld [vmem:[%s2327_s28 + $0x10] sm:$0x3]  ;;  %v327_v13 = vrot.slane %v2332_v2, 1  ;;  %v328_v14 = vrot.slane %v188_v7, 1  ;;  %v2365_v31 = vld [vmem:[%s2327_s28 + $0x48] sm:$0xff] }
  0x1f   : > { %753 = vrot.lane.b32.xlu0 %v236_v3, %s2243_s29  ;;  %253 = vst.msk [vmem:[#allocation2 + $0x8] sm:$0xff] %vm251_vm0, %v236_v3  ;;  %v317_v15 = vrot.slane %v2336_v8, 1  ;;  %v318_v16 = vrot.slane %v2339_v9, 1  ;;  %v186_v17 = vld [vmem:[%s2327_s28 + $0x28] sm:$0x3]  ;;  %v320_v18 = vrot.slane %v183_v12, 1  ;;  %v324_v23 = vsel %vm316_vm1, %v322_v4, %v323_v5 }
  0x20   : > { %755 = vrot.lane.b32.xlu1 %v2342_v11, %s2243_s29  ;;  %254 = vst.msk [vmem:[#allocation2 + $0x10] sm:$0xff] %vm251_vm0, %v2342_v11  ;;  %v527_v19 = vrot.slane %v2336_v8, 2  ;;  %v528_v20 = vrot.slane %v2339_v9, 2  ;;  %v530_v21 = vrot.slane %v183_v12, 2  ;;  %v325_v24 = vrot.slane %v186_v17, 1  ;;  %v2368_v32 = vld [vmem:[%s2327_s28 + $0x50] sm:$0xff] }
  0x21   : > { %v319_v22 = vsel %vm316_vm1, %v317_v15, %v318_v16  ;;  %v534_v25 = vsel %vm526_vm2, %v532_v6, %v533_v10  ;;  %v189_v26 = vld [vmem:[%s2327_s28 + $0x40] sm:$0x3]  ;;  %v321_v27 = vsel %vm316_vm1, %v318_v16, %v320_v18  ;;  %v535_v30 = vrot.slane %v186_v17, 2  ;;  %v2383_v43 = vld [vmem:[%s2327_s28 + $0x68] sm:$0xff]  ;;  %v2394_v49 = vld [vmem:[%s2327_s28 + $0x78] sm:$0xff]  ;;  %s2993_s27 = scalar_lea.vmem [#allocation3], %s1836_s26 }
  0x22   : > { %v529_v28 = vsel %vm526_vm2, %v527_v19, %v528_v20  ;;  %v531_v29 = vsel %vm526_vm2, %v528_v20, %v530_v21  ;;  %v429_v33 = vpack.c.bf16 %v321_v27, %v319_v22  ;;  %v326_v35 = vsel %vm316_vm1, %v323_v5, %v325_v24  ;;  %v2380_v42 = vld [vmem:[%s2327_s28 + $0x60] sm:$0xff]  ;;  %v192_v54 = vld [vmem:[%s2327_s28 + $0x58] sm:$0x3]  ;;  %v2413_v56 = vld [vmem:[%s2327_s28 + $0x90] sm:$0xff] }
  0x23   : > { %v639_v34 = vpack.c.bf16 %v531_v29, %v529_v28  ;;  %v536_v36 = vsel %vm526_vm2, %v533_v10, %v535_v30  ;;  %v330_v37 = vrot.slane %v189_v26, 1  ;;  %v537_v38 = vrot.slane %v2332_v2, 2  ;;  %v2397_v50 = vld [vmem:[%s2327_s28 + $0x80] sm:$0xff]  ;;  %v2416_v57 = vld [vmem:[%s2327_s28 + $0x98] sm:$0xff]  ;;  %v202_v2 = vld [vmem:[%s2327_s28 + $0xa8] sm:$0xff] }
  0x24   : > { %461 = vrot.lane.b32.xlu0 %v429_v33, %s2244_s30  ;;  %v430_v39 = vpack.c.bf16 %v326_v35, %v324_v23  ;;  %v640_v40 = vpack.c.bf16 %v536_v36, %v534_v25  ;;  %v2377_v41 = vpack.c.bf16 %v2368_v32, %v2365_v31  ;;  %v538_v44 = vrot.slane %v188_v7, 2  ;;  %v203_v3 = vld [vmem:[%s2327_s28 + $0xb0] sm:$0xff]  ;;  %v204_v7 = vld [vmem:[%s2327_s28 + $0xb8] sm:$0x3]  ;;  %v206_v15 = vld [vmem:[%s2327_s28 + $0xc8] sm:$0xff] }
  0x25   : > { %671 = vrot.lane.b32.xlu1 %v639_v34, %s2245_s4  ;;  %v329_v45 = vsel %vm316_vm1, %v327_v13, %v328_v14  ;;  %v331_v46 = vsel %vm316_vm1, %v328_v14, %v330_v37  ;;  %v540_v47 = vrot.slane %v189_v26, 2  ;;  %v2391_v48 = vpack.c.bf16 %v2383_v43, %v2380_v42  ;;  %v205_v14 = vld [vmem:[%s2327_s28 + $0xc0] sm:$0xff]  ;;  %v2145_v16 = vld [vmem:[%s3096_s1 + $0x8] sm:$0xff]   ;;  %v207_v23 = vld [vmem:[%s2327_s28 + $0xd0] sm:$0x3] }
  0x26   : > { %255 = vst.msk [vmem:[#allocation2 + $0x18] sm:$0xff] %vm251_vm0, %v2377_v41  ;;  %v2401_v51 = vpack.c.bf16 %v331_v46, %v329_v45  ;;  %v539_v52 = vsel %vm526_vm2, %v537_v38, %v538_v44  ;;  %v2410_v55 = vpack.c.bf16 %v2397_v50, %v2394_v49  ;;  %v332_v59 = vrot.slane %v2365_v31, 1  ;;  %2046 = vmatprep.subr.bf16.mxu0 %v2145_v16  ;;  %v209_v33 = vld [vmem:[%s2327_s28 + $0xe0] sm:$0xff]  ;;  %v212_v62 = vld [vmem:[%s2327_s28 + $0xf8] sm:$0xff] }
  0x27   : > { %v541_v53 = vsel %vm526_vm2, %v538_v44, %v540_v47  ;;  %256 = vst.msk [vmem:[#allocation2 + $0x20] sm:$0xff] %vm251_vm0, %v2391_v48  ;;  %v333_v60 = vrot.slane %v2368_v32, 1  ;;  %v335_v61 = vrot.slane %v192_v54, 1  ;;  %v542_v63 = vrot.slane %v2365_v31, 2  ;;  %2083 = vmatprep.subr.bf16.mxu1 %v2145_v16  ;;  %2047 = vmatpush3.bf16.msra.mxu0 %v2145_v16  ;;  %v210_v44 = vld [vmem:[%s2327_s28 + $0xe8] sm:$0x3] }
  0x28   : > { %463 = vrot.lane.b32.xlu0 %v430_v39, %s2244_s30  ;;  %v2421_v58 = vpack.c.bf16 %v541_v53, %v539_v52  ;;  %257 = vst.msk [vmem:[#allocation2 + $0x28] sm:$0xff] %vm251_vm0, %v2410_v55  ;;  %v543_v0 = vrot.slane %v2368_v32, 2  ;;  %v2434_v1 = vpack.c.bf16 %v2416_v57, %v2413_v56  ;;  %v545_v4 = vrot.slane %v192_v54, 2  ;;  %v208_v32 = vld [vmem:[%s2327_s28 + $0xd8] sm:$0xff]  ;;  %2086 = vmatpush3.bf16.msra.mxu1 %v2145_v16  ;;  %v215_v16 = vld [vmem:[%s2327_s28 + $0x110] sm:$0xff] }
  0x29   : > { %673 = vrot.lane.b32.xlu1 %v640_v40, %s2245_s4  ;;  %v334_v5 = vsel %vm316_vm1, %v332_v59, %v333_v60  ;;  %v336_v6 = vsel %vm316_vm1, %v333_v60, %v335_v61  ;;  %v2446_v10 = vpack.c.bf16 %v203_v3, %v202_v2  ;;  %v352_v12 = vrot.slane %v202_v2, 1  ;;  %v211_v61 = vld [vmem:[%s2327_s28 + $0xf0] sm:$0xff] }
  0x2a   : > { %258 = vst.msk [vmem:[#allocation2 + $0x30] sm:$0xff] %vm251_vm0, %v2434_v1  ;;  %v353_v13 = vrot.slane %v203_v3, 1  ;;  %v544_v17 = vsel %vm526_vm2, %v542_v63, %v543_v0  ;;  %v562_v18 = vrot.slane %v202_v2, 2  ;;  %v2454_v19 = vpack.c.bf16 %v336_v6, %v334_v5  ;;  %v2503_v5 = vld [vmem:[%s2327_s28 + $0x70] sm:$0x3] }
  0x2b   : > { %v546_v20 = vsel %vm526_vm2, %v543_v0, %v545_v4  ;;  %v563_v21 = vrot.slane %v203_v3, 2  ;;  %259 = vst.msk [vmem:[#allocation2 + $0x38] sm:$0xff] %vm251_vm0, %v2446_v10  ;;  %v355_v24 = vrot.slane %v204_v7, 1  ;;  %v565_v25 = vrot.slane %v204_v7, 2 }
  0x2c   : > { %830 = vrot.lane.b32.xlu0 %v430_v39, %s2246_s5  ;;  %v354_v22 = vsel %vm316_vm1, %v352_v12, %v353_v13  ;;  %v2465_v26 = vpack.c.bf16 %v206_v15, %v205_v14  ;;  %v357_v27 = vrot.slane %v205_v14, 1  ;;  %v358_v29 = vrot.slane %v206_v15, 1  ;;  %v213_v12 = vld [vmem:[%s2327_s28 + $0x100] sm:$0x3] }
  0x2d   : > { %832 = vrot.lane.b32.xlu1 %v2401_v51, %s2246_s5  ;;  %v564_v28 = vsel %vm526_vm2, %v562_v18, %v563_v21  ;;  %v567_v30 = vrot.slane %v205_v14, 2  ;;  %v568_v31 = vrot.slane %v206_v15, 2  ;;  %v566_v34 = vsel %vm526_vm2, %v563_v21, %v565_v25  ;;  %v214_v15 = vld [vmem:[%s2327_s28 + $0x108] sm:$0xff] }
  0x2e   : > { %260 = vst.msk [vmem:[#allocation2 + $0x40] sm:$0xff] %vm251_vm0, %v2465_v26  ;;  %v360_v35 = vrot.slane %v207_v23, 1  ;;  %v570_v36 = vrot.slane %v207_v23, 2  ;;  %v2476_v38 = vpack.c.bf16 %v566_v34, %v564_v28  ;;  %v359_v39 = vsel %vm316_vm1, %v357_v27, %v358_v29  ;;  %v216_v34 = vld [vmem:[%s2327_s28 + $0x118] sm:$0x3] }
  0x2f   : > { %v2487_v47 = vpack.c.bf16 %v209_v33, %v208_v32  ;;  %v362_v52 = vrot.slane %v208_v32, 1  ;;  %v363_v59 = vrot.slane %v209_v33, 1  ;;  %v572_v60 = vrot.slane %v208_v32, 2 }
  0x30   : > { %904 = vrot.lane.b32.xlu0 %v640_v40, %s2247_s8  ;;  %v569_v40 = vsel %vm526_vm2, %v567_v30, %v568_v31  ;;  %v361_v45 = vsel %vm316_vm1, %v358_v29, %v360_v35  ;;  %v571_v46 = vsel %vm526_vm2, %v568_v31, %v570_v36  ;;  %v573_v63 = vrot.slane %v209_v33, 2  ;;  %v2146_v30 = vld [vmem:[%s3096_s1 + $0x10] ss:$0 sps:$4 sm:$0x33]  }
  0x31   : > { %906 = vrot.lane.b32.xlu1 %v2421_v58, %s2247_s8  ;;  %v2489_v53 = vpack.c.bf16 %v361_v45, %v359_v39  ;;  %v2491_v54 = vpack.c.bf16 %v571_v46, %v569_v40  ;;  %261 = vst.msk [vmem:[#allocation2 + $0x48] sm:$0xff] %vm251_vm0, %v2487_v47  ;;  %v235_v0 = vpack.c.bf16 %v2339_v9, %v2336_v8  ;;  %v365_v2 = vrot.slane %v210_v44, 1 }
  0x32   : > { %v2499_v3 = vpack.c.bf16 %v546_v20, %v544_v17  ;;  %v337_v4 = vrot.slane %v2380_v42, 1  ;;  %v364_v6 = vsel %vm316_vm1, %v362_v52, %v363_v59  ;;  %v575_v7 = vrot.slane %v210_v44, 2  ;;  %2088 = vmatprep.subr.msk.bf16.mxu0 %vm1272_vm3, %v2146_v30  ;;  %2089 = vmatprep.subr.msk.bf16.mxu1 %vm1272_vm3, %v2146_v30 }
  0x33   : > { %252 = vst.msk [vmem:[#allocation2] sm:$0xff] %vm251_vm0, %v235_v0  ;;  %v366_v8 = vsel %vm316_vm1, %v363_v59, %v365_v2  ;;  %v574_v9 = vsel %vm526_vm2, %v572_v60, %v573_v63  ;;  %v367_v14 = vrot.slane %v211_v61, 1  ;;  %v368_v20 = vrot.slane %v212_v62, 1 }
  0x34   : > { %971 = vrot.lane.b32.xlu0 %v2342_v11, %s2248_s11  ;;  %v356_v11 = vsel %vm316_vm1, %v353_v13, %v355_v24  ;;  %v2514_v13 = vpack.c.bf16 %v212_v62, %v211_v61  ;;  %v2518_v17 = vpack.c.bf16 %v366_v8, %v364_v6  ;;  %v576_v18 = vsel %vm526_vm2, %v573_v63, %v575_v7  ;;  %v218_v8 = vld [vmem:[%s2327_s28 + $0x128] sm:$0xff] }
  0x35   : > { %973 = vrot.lane.b32.xlu1 %v2377_v41, %s2248_s11  ;;  %v2474_v37 = vpack.c.bf16 %v356_v11, %v354_v22  ;;  %v577_v21 = vrot.slane %v211_v61, 2  ;;  %v338_v22 = vrot.slane %v2383_v43, 1  ;;  %v578_v23 = vrot.slane %v212_v62, 2 }
  0x36   : > { %262 = vst.msk [vmem:[#allocation2 + $0x50] sm:$0xff] %vm251_vm0, %v2514_v13  ;;  %v370_v24 = vrot.slane %v213_v12, 1  ;;  %v340_v25 = vrot.slane %v2503_v5, 1  ;;  %v369_v27 = vsel %vm316_vm1, %v367_v14, %v368_v20  ;;  %v580_v28 = vrot.slane %v213_v12, 2 }
  0x37   : > { %v2528_v29 = vpack.c.bf16 %v215_v16, %v214_v15  ;;  %v579_v32 = vsel %vm526_vm2, %v577_v21, %v578_v23  ;;  %v372_v33 = vrot.slane %v214_v15, 1  ;;  %v373_v11 = vrot.slane %v215_v16, 1 }
  0x38   : > { %1048 = vrot.lane.b32.xlu0 %v2401_v51, %s2249_s17  ;;  %v371_v31 = vsel %vm316_vm1, %v368_v20, %v370_v24  ;;  %v581_v36 = vsel %vm526_vm2, %v578_v23, %v580_v28  ;;  %v582_v39 = vrot.slane %v214_v15, 2  ;;  %v583_v40 = vrot.slane %v215_v16, 2  ;;  %v198_v20 = vld [vmem:[%s2327_s28 + $0x88] sm:$0x3] }
  0x39   : > { %1050 = vrot.lane.b32.xlu1 %v2454_v19, %s2249_s17  ;;  %v2540_v35 = vpack.c.bf16 %v371_v31, %v369_v27  ;;  %263 = vst.msk [vmem:[#allocation2 + $0x58] sm:$0xff] %vm251_vm0, %v2528_v29  ;;  %v2545_v44 = vpack.c.bf16 %v581_v36, %v579_v32  ;;  %v374_v45 = vsel %vm316_vm1, %v372_v33, %v373_v11  ;;  %v1274_v46 = vsel %vm1272_vm3, %v2146_v30, 0  ;;  %v220_v36 = vld [vmem:[%s2327_s28 + $0x138] sm:$0xff] }
  0x3a   : > { %v375_v52 = vrot.slane %v216_v34, 1  ;;  %v584_v59 = vsel %vm526_vm2, %v582_v39, %v583_v40  ;;  %v585_v60 = vrot.slane %v216_v34, 2  ;;  %v547_v61 = vrot.slane %v2380_v42, 2  ;;  %2049 = vmatpush3.bf16.msra.mxu0 %v1274_v46  ;;  %2087 = vmatpush3.bf16.msra.mxu1 %v1274_v46  ;;  %v217_v42 = vld [vmem:[%s2327_s28 + $0x120] sm:$0xff] }
  0x3b   : > { %v548_v62 = vrot.slane %v2383_v43, 2  ;;  %v339_v63 = vsel %vm316_vm1, %v337_v4, %v338_v22  ;;  %v341_v0 = vsel %vm316_vm1, %v338_v22, %v340_v25  ;;  %v550_v2 = vrot.slane %v2503_v5, 2  ;;  %v219_v4 = vld [vmem:[%s2327_s28 + $0x130] sm:$0x3]  ;;  %v221_v39 = vld [vmem:[%s2327_s28 + $0x140] sm:$0xff] }
  0x3c   : > { %1122 = vrot.lane.b32.xlu0 %v2421_v58, %s2250_s19  ;;  %v376_v6 = vsel %vm316_vm1, %v373_v11, %v375_v52  ;;  %v586_v7 = vsel %vm526_vm2, %v583_v40, %v585_v60  ;;  %v2566_v43 = vpack.c.bf16 %v218_v8, %v217_v42  ;;  %v433_v5 = vpack.c.bf16 %v341_v0, %v339_v63 }
  0x3d   : > { %465 = vrot.lane.b32.xlu1 %v2401_v51, %s2244_s30  ;;  %v2522_v51 = vpack.c.bf16 %v576_v18, %v574_v9  ;;  %v2562_v12 = vpack.c.bf16 %v586_v7, %v584_v59  ;;  %v377_v9 = vrot.slane %v217_v42, 1  ;;  %v378_v14 = vrot.slane %v218_v8, 1 }
  0x3e   : > { %v549_v15 = vsel %vm526_vm2, %v547_v61, %v548_v62  ;;  %v551_v16 = vsel %vm526_vm2, %v548_v62, %v550_v2  ;;  %264 = vst.msk [vmem:[#allocation2 + $0x60] sm:$0xff] %vm251_vm0, %v2566_v43  ;;  %v380_v18 = vrot.slane %v219_v4, 1  ;;  %v587_v21 = vrot.slane %v217_v42, 2 }
  0x3f   : > { %v588_v22 = vrot.slane %v218_v8, 2  ;;  %v379_v23 = vsel %vm316_vm1, %v377_v9, %v378_v14  ;;  %v643_v24 = vpack.c.bf16 %v551_v16, %v549_v15  ;;  %v590_v27 = vrot.slane %v219_v4, 2  ;;  %v201_v9 = vld [vmem:[%s2327_s28 + $0xa0] sm:$0x3] }
  0x40   : > { %1124 = vrot.lane.b32.xlu0 %v2499_v3, %s2250_s19  ;;  %v342_v28 = vrot.slane %v2394_v49, 1  ;;  %v343_v30 = vrot.slane %v2397_v50, 1  ;;  %v345_v31 = vrot.slane %v198_v20, 1  ;;  %v2598_v40 = vpack.c.bf16 %v221_v39, %v220_v36 }
  0x41   : > { %467 = vrot.lane.b32.xlu1 %v2454_v19, %s2244_s30  ;;  %v589_v32 = vsel %vm526_vm2, %v587_v21, %v588_v22  ;;  %v591_v33 = vsel %vm526_vm2, %v588_v22, %v590_v27  ;;  %v382_v52 = vrot.slane %v220_v36, 1  ;;  %v552_v59 = vrot.slane %v2394_v49, 2  ;;  %v224_v27 = vld [vmem:[%s2327_s28 + $0x158] sm:$0xff] }
  0x42   : > { %v2589_v11 = vpack.c.bf16 %v591_v33, %v589_v32  ;;  %v346_v34 = vsel %vm316_vm1, %v343_v30, %v345_v31  ;;  %v553_v60 = vrot.slane %v2397_v50, 2  ;;  %v555_v61 = vrot.slane %v198_v20, 2  ;;  %265 = vst.msk [vmem:[#allocation2 + $0x68] sm:$0xff] %vm251_vm0, %v2598_v40 }
  0x43   : > { %v592_v2 = vrot.slane %v220_v36, 2  ;;  %v347_v15 = vrot.slane %v2413_v56, 1  ;;  %v348_v16 = vrot.slane %v2416_v57, 1  ;;  %v558_v20 = vrot.slane %v2416_v57, 2 }
  0x44   : > { %675 = vrot.lane.b32.xlu0 %v2421_v58, %s2245_s4  ;;  %v2560_v58 = vpack.c.bf16 %v376_v6, %v374_v45  ;;  %v222_v45 = vld [vmem:[%s2327_s28 + $0x148] sm:$0x3]  ;;  %v554_v49 = vsel %vm526_vm2, %v552_v59, %v553_v60  ;;  %v556_v50 = vsel %vm526_vm2, %v553_v60, %v555_v61  ;;  %v593_v6 = vrot.slane %v221_v39, 2 }
  0x45   : > { %677 = vrot.lane.b32.xlu1 %v2499_v3, %s2245_s4  ;;  %v385_v62 = vrot.slane %v222_v45, 1  ;;  %v595_v7 = vrot.slane %v222_v45, 2  ;;  %v644_v42 = vpack.c.bf16 %v556_v50, %v554_v49  ;;  %v349_v21 = vsel %vm316_vm1, %v347_v15, %v348_v16  ;;  %v226_v61 = vld [vmem:[%s2327_s28 + $0x168] sm:$0xff] }
  0x46   : > { %v594_v8 = vsel %vm526_vm2, %v592_v2, %v593_v6  ;;  %v388_v31 = vrot.slane %v224_v27, 1 }
  0x47   : > { %v596_v4 = vsel %vm526_vm2, %v593_v6, %v595_v7 }
  0x48   : > { %757 = vrot.lane.b32.xlu0 %v2377_v41, %s2243_s29  ;;  %v381_v41 = vsel %vm316_vm1, %v378_v14, %v380_v18  ;;  %v2622_v14 = vpack.c.bf16 %v596_v4, %v594_v8  ;;  %v557_v18 = vrot.slane %v2413_v56, 2 }
  0x49   : > { %759 = vrot.lane.b32.xlu1 %v2391_v48, %s2243_s29  ;;  %v2583_v25 = vpack.c.bf16 %v381_v41, %v379_v23  ;;  %v560_v23 = vrot.slane %v201_v9, 2  ;;  %v223_v41 = vld [vmem:[%s2327_s28 + $0x150] sm:$0xff] }
  0x4a   : > { %v387_v56 = vrot.slane %v223_v41, 1  ;;  %v559_v57 = vsel %vm526_vm2, %v557_v18, %v558_v20 }
  0x4b   : > { %v561_v32 = vsel %vm526_vm2, %v558_v20, %v560_v23 }
  0x4c   : > { %834 = vrot.lane.b32.xlu0 %v2454_v19, %s2246_s5  ;;  %v344_v19 = vsel %vm316_vm1, %v342_v28, %v343_v30  ;;  %v2636_v28 = vpack.c.bf16 %v224_v27, %v223_v41  ;;  %v225_v30 = vld [vmem:[%s2327_s28 + $0x160] sm:$0x3] }
  0x4d   : > { %836 = vrot.lane.b32.xlu1 %v433_v5, %s2246_s5  ;;  %v434_v46 = vpack.c.bf16 %v346_v34, %v344_v19  ;;  %v390_v33 = vrot.slane %v225_v30, 1  ;;  %v597_v19 = vrot.slane %v223_v41, 2  ;;  %v598_v34 = vrot.slane %v224_v27, 2 }
  0x4e   : > { %266 = vst.msk [vmem:[#allocation2 + $0x70] sm:$0xff] %vm251_vm0, %v2636_v28 }
  0x4f   : > { %v391_v36 = vsel %vm316_vm1, %v388_v31, %v390_v33 }
  0x50   : > { %908 = vrot.lane.b32.xlu0 %v2499_v3, %s2247_s8  ;;  %v383_v3 = vrot.slane %v221_v39, 1  ;;  %v645_v39 = vpack.c.bf16 %v561_v32, %v559_v57 }
  0x51   : > { %910 = vrot.lane.b32.xlu1 %v643_v24, %s2247_s8 }
  0x52   : > { %v384_v63 = vsel %vm316_vm1, %v382_v52, %v383_v3  ;;  %v600_v52 = vrot.slane %v225_v30, 2 }
  0x54   : > { %975 = vrot.lane.b32.xlu0 %v2391_v48, %s2248_s11  ;;  %v386_v48 = vsel %vm316_vm1, %v383_v3, %v385_v62  ;;  %v599_v3 = vsel %vm526_vm2, %v597_v19, %v598_v34  ;;  %v601_v59 = vsel %vm526_vm2, %v598_v34, %v600_v52  ;;  %v227_v62 = vld [vmem:[%s2327_s28 + $0x170] sm:$0xff] }
  0x55   : > { %977 = vrot.lane.b32.xlu1 %v2410_v55, %s2248_s11  ;;  %v2613_v0 = vpack.c.bf16 %v386_v48, %v384_v63  ;;  %v2655_v60 = vpack.c.bf16 %v601_v59, %v599_v3  ;;  %v2661_v63 = vpack.c.bf16 %v227_v62, %v226_v61  ;;  %v392_v48 = vrot.slane %v226_v61, 1 }
  0x56   : > { %v393_v49 = vrot.slane %v227_v62, 1 }
  0x57   : > { %267 = vst.msk [vmem:[#allocation2 + $0x78] sm:$0xff] %vm251_vm0, %v2661_v63 }
  0x58   : > { %1052 = vrot.lane.b32.xlu0 %v433_v5, %s2249_s17  ;;  %v394_v2 = vsel %vm316_vm1, %v392_v48, %v393_v49 }
  0x59   : > { %1054 = vrot.lane.b32.xlu1 %v434_v46, %s2249_s17 }
  0x5c   : > { %1126 = vrot.lane.b32.xlu0 %v643_v24, %s2250_s19 }
  0x5d   : > { %469 = vrot.lane.b32.xlu1 %v433_v5, %s2244_s30  ;;  %v350_v5 = vrot.slane %v201_v9, 1 }
  0x5f   : > { %v351_v22 = vsel %vm316_vm1, %v348_v16, %v350_v5 }
  0x60   : > { %1128 = vrot.lane.b32.xlu0 %v644_v42, %s2250_s19 }
  0x61   : > { %471 = vrot.lane.b32.xlu1 %v434_v46, %s2244_s30 }
  0x64   : > { %679 = vrot.lane.b32.xlu0 %v643_v24, %s2245_s4  ;;  %v435_v24 = vpack.c.bf16 %v351_v22, %v349_v21 }
  0x65   : > { %681 = vrot.lane.b32.xlu1 %v644_v42, %s2245_s4 }
  0x68   : > { %761 = vrot.lane.b32.xlu0 %v2410_v55, %s2243_s29  ;;  %v389_v55 = vsel %vm316_vm1, %v387_v56, %v388_v31 }
  0x69   : > { %763 = vrot.lane.b32.xlu1 %v2434_v1, %s2243_s29  ;;  %v2651_v45 = vpack.c.bf16 %v391_v36, %v389_v55 }
  0x6c   : > { %838 = vrot.lane.b32.xlu0 %v434_v46, %s2246_s5  ;;  %v228_v46 = vld [vmem:[%s2327_s28 + $0x178] sm:$0x3] }
  0x6d   : > { %840 = vrot.lane.b32.xlu1 %v435_v24, %s2246_s5  ;;  %v395_v50 = vrot.slane %v228_v46, 1  ;;  %v605_v8 = vrot.slane %v228_v46, 2 }
  0x6f   : > { %v396_v6 = vsel %vm316_vm1, %v393_v49, %v395_v50 }
  0x70   : > { %912 = vrot.lane.b32.xlu0 %v644_v42, %s2247_s8  ;;  %v2675_v7 = vpack.c.bf16 %v396_v6, %v394_v2  ;;  %v603_v42 = vrot.slane %v227_v62, 2 }
  0x71   : > { %914 = vrot.lane.b32.xlu1 %v645_v39, %s2247_s8 }
  0x72   : > { %v606_v9 = vsel %vm526_vm2, %v603_v42, %v605_v8 }
  0x74   : > { %979 = vrot.lane.b32.xlu0 %v2434_v1, %s2248_s11  ;;  %v602_v1 = vrot.slane %v226_v61, 2 }
  0x75   : > { %981 = vrot.lane.b32.xlu1 %v2446_v10, %s2248_s11 }
  0x76   : > { %v604_v4 = vsel %vm526_vm2, %v602_v1, %v603_v42 }
  0x77   : > { %v2681_v15 = vpack.c.bf16 %v606_v9, %v604_v4 }
  0x78   : > { %1056 = vrot.lane.b32.xlu0 %v435_v24, %s2249_s17 }
  0x79   : > { %1058 = vrot.lane.b32.xlu1 %v2474_v37, %s2249_s17 }
  0x7c   : > { %1130 = vrot.lane.b32.xlu0 %v645_v39, %s2250_s19 }
  0x7d   : > { %473 = vrot.lane.b32.xlu1 %v435_v24, %s2244_s30 }
  0x80   : > { %1132 = vrot.lane.b32.xlu0 %v2476_v38, %s2250_s19 }
  0x81   : > { %475 = vrot.lane.b32.xlu1 %v2474_v37, %s2244_s30 }
  0x84   : > { %683 = vrot.lane.b32.xlu0 %v645_v39, %s2245_s4 }
  0x85   : > { %685 = vrot.lane.b32.xlu1 %v2476_v38, %s2245_s4 }
  0x88   : > { %765 = vrot.lane.b32.xlu0 %v2446_v10, %s2243_s29 }
  0x89   : > { %767 = vrot.lane.b32.xlu1 %v2465_v26, %s2243_s29 }
  0x8c   : > { %842 = vrot.lane.b32.xlu0 %v2474_v37, %s2246_s5 }
  0x8d   : > { %844 = vrot.lane.b32.xlu1 %v2489_v53, %s2246_s5 }
  0x90   : > { %916 = vrot.lane.b32.xlu0 %v2476_v38, %s2247_s8 }
  0x91   : > { %918 = vrot.lane.b32.xlu1 %v2491_v54, %s2247_s8  ;;  %v754_v16 = vpop.permute.xlu0 %753 }
  0x92   : > { %v756_v5 = vpop.permute.xlu1 %755 }
  0x94   : > { %983 = vrot.lane.b32.xlu0 %v2465_v26, %s2248_s11 }
  0x95   : > { %985 = vrot.lane.b32.xlu1 %v2487_v47, %s2248_s11 }
  0x96   : > { %v462_v10 = vpop.permute.xlu0 %461 }
  0x97   : > { %v672_v37 = vpop.permute.xlu1 %671  ;;  %510 = vst.msk [vmem:[#allocation2] sm:$0xff] %vm509_vm4, %v462_v10 }
  0x98   : > { %720 = vst.msk [vmem:[#allocation2] sm:$0xff] %vm719_vm5, %v672_v37  ;;  %1060 = vrot.lane.b32.xlu0 %v2489_v53, %s2249_s17  ;;  %v229_v37 = vld [vmem:[%s2327_s28 + $0x180] sm:$0xff] }
  0x99   : > { %1062 = vrot.lane.b32.xlu1 %v2518_v17, %s2249_s17  ;;  %802 = vst.msk [vmem:[#allocation2] sm:$0xff] %vm801_vm6, %v754_v16 }
  0x9a   : > { %v464_v26 = vpop.permute.xlu0 %463 }
  0x9b   : > { %v674_v38 = vpop.permute.xlu1 %673  ;;  %511 = vst.msk [vmem:[#allocation2 + $0x8] sm:$0xff] %vm509_vm4, %v464_v26  ;;  %v230_v26 = vld [vmem:[%s2327_s28 + $0x188] sm:$0xff] }
  0x9c   : > { %721 = vst.msk [vmem:[#allocation2 + $0x8] sm:$0xff] %vm719_vm5, %v674_v38  ;;  %1134 = vrot.lane.b32.xlu0 %v2491_v54, %s2250_s19  ;;  %v231_v38 = vld [vmem:[%s2327_s28 + $0x190] sm:$0x3] }
  0x9d   : > { %477 = vrot.lane.b32.xlu1 %v2489_v53, %s2244_s30  ;;  %803 = vst.msk [vmem:[#allocation2 + $0x8] sm:$0xff] %vm801_vm6, %v756_v5 }
  0x9e   : > { %v831_v18 = vpop.permute.xlu0 %830 }
  0x9f   : > { %v833_v20 = vpop.permute.xlu1 %832  ;;  %879 = vst.msk [vmem:[#allocation2] sm:$0xff] %vm878_vm7, %v831_v18  ;;  %v821_v18 = vrot.slane %v229_v37, 1 }
  0xa0   : > { %880 = vst.msk [vmem:[#allocation2 + $0x8] sm:$0xff] %vm878_vm7, %v833_v20  ;;  %1136 = vrot.lane.b32.xlu0 %v2522_v51, %s2250_s19  ;;  %v822_v20 = vrot.slane %v230_v26, 1 }
  0xa1   : > { %479 = vrot.lane.b32.xlu1 %v2518_v17, %s2244_s30 }
  0xa2   : > { %v905_v21 = vpop.permute.xlu0 %904 }
  0xa3   : > { %v907_v22 = vpop.permute.xlu1 %906  ;;  %953 = vst.msk [vmem:[#allocation2] sm:$0xff] %vm952_vm8, %v905_v21  ;;  %v824_v21 = vrot.slane %v231_v38, 1 }
  0xa4   : > { %954 = vst.msk [vmem:[#allocation2 + $0x8] sm:$0xff] %vm952_vm8, %v907_v22  ;;  %687 = vrot.lane.b32.xlu0 %v2491_v54, %s2245_s4 }
  0xa5   : > { %689 = vrot.lane.b32.xlu1 %v2522_v51, %s2245_s4 }
  0xa6   : > { %v972_v53 = vpop.permute.xlu0 %971 }
  0xa7   : > { %v974_v23 = vpop.permute.xlu1 %973  ;;  %1020 = vst.msk [vmem:[#allocation2] sm:$0xff] %vm1019_vm9, %v972_v53  ;;  %v736_v53 = vpack.c.bf16 %v230_v26, %v229_v37 }
  0xa8   : > { %1021 = vst.msk [vmem:[#allocation2 + $0x8] sm:$0xff] %vm1019_vm9, %v974_v23  ;;  %769 = vrot.lane.b32.xlu0 %v2487_v47, %s2243_s29  ;;  %v895_v23 = vrot.slane %v229_v37, 2 }
  0xa9   : > { %771 = vrot.lane.b32.xlu1 %v2514_v13, %s2243_s29 }
  0xaa   : > { %v1049_v41 = vpop.permute.xlu0 %1048 }
  0xab   : > { %v1051_v27 = vpop.permute.xlu1 %1050  ;;  %1097 = vst.msk [vmem:[#allocation2] sm:$0xff] %vm1096_vm10, %v1049_v41  ;;  %v896_v41 = vrot.slane %v230_v26, 2 }
  0xac   : > { %1098 = vst.msk [vmem:[#allocation2 + $0x8] sm:$0xff] %vm1096_vm10, %v1051_v27  ;;  %846 = vrot.lane.b32.xlu0 %v2518_v17, %s2246_s5  ;;  %v823_v27 = vsel %vm316_vm1, %v821_v18, %v822_v20 }
  0xad   : > { %848 = vrot.lane.b32.xlu1 %v2540_v35, %s2246_s5 }
  0xae   : > { %v1123_v54 = vpop.permute.xlu0 %1122 }
  0xaf   : > { %v466_v30 = vpop.permute.xlu1 %465  ;;  %1171 = vst.msk [vmem:[#allocation2] sm:$0xff] %vm1170_vm11, %v1123_v54  ;;  %v825_v54 = vsel %vm316_vm1, %v822_v20, %v824_v21 }
  0xb0   : > { %512 = vst.msk [vmem:[#allocation2 + $0x10] sm:$0xff] %vm509_vm4, %v466_v30  ;;  %920 = vrot.lane.b32.xlu0 %v2522_v51, %s2247_s8  ;;  %v898_v30 = vrot.slane %v231_v38, 2 }
  0xb1   : > { %922 = vrot.lane.b32.xlu1 %v2545_v44, %s2247_s8 }
  0xb2   : > { %v1125_v47 = vpop.permute.xlu0 %1124 }
  0xb3   : > { %v468_v24 = vpop.permute.xlu1 %467  ;;  %1172 = vst.msk [vmem:[#allocation2 + $0x8] sm:$0xff] %vm1170_vm11, %v1125_v47 }
  0xb4   : > { %513 = vst.msk [vmem:[#allocation2 + $0x18] sm:$0xff] %vm509_vm4, %v468_v24  ;;  %987 = vrot.lane.b32.xlu0 %v2514_v13, %s2248_s11 }
  0xb5   : > { %989 = vrot.lane.b32.xlu1 %v2528_v29, %s2248_s11 }
  0xb6   : > { %v676_v17 = vpop.permute.xlu0 %675  ;;  %v1187_v31 = vld [vmem:[#allocation2] sm:$0xff] }
  0xb7   : > { %v678_v56 = vpop.permute.xlu1 %677  ;;  %722 = vst.msk [vmem:[#allocation2 + $0x10] sm:$0xff] %vm719_vm5, %v676_v17  ;;  %2050 = vmatprep.mubr.msk.bf16.mxu0 %vm1223_vm12, %v1187_v31  ;;  %v897_v17 = vsel %vm526_vm2, %v895_v23, %v896_v41 }
  0xb8   : > { %723 = vst.msk [vmem:[#allocation2 + $0x18] sm:$0xff] %vm719_vm5, %v678_v56  ;;  %1064 = vrot.lane.b32.xlu0 %v2540_v35, %s2249_s17  ;;  %v899_v56 = vsel %vm526_vm2, %v896_v41, %v898_v30 }
  0xb9   : > { %1066 = vrot.lane.b32.xlu1 %v2560_v58, %s2249_s17 }
  0xba   : > { %v758_v13 = vpop.permute.xlu0 %757  ;;  %v1188_v57 = vld [vmem:[#allocation2 + $0x8] sm:$0xff] }
  0xbb   : > { %v760_v51 = vpop.permute.xlu1 %759  ;;  %804 = vst.msk [vmem:[#allocation2 + $0x10] sm:$0xff] %vm801_vm6, %v758_v13  ;;  %2051 = vmatmul.mubr.msk.bf16.vlgmr.msra.gmra.mrb[0].mxu0 %vm1223_vm12, %v1188_v57  ;;  %v233_v57 = vld [vmem:[%s2327_s28 + $0x1a0] sm:$0xff] }
  0xbc   : > { %805 = vst.msk [vmem:[#allocation2 + $0x18] sm:$0xff] %vm801_vm6, %v760_v51  ;;  %1138 = vrot.lane.b32.xlu0 %v2545_v44, %s2250_s19  ;;  %v232_v51 = vld [vmem:[%s2327_s28 + $0x198] sm:$0xff] }
  0xbd   : > { %481 = vrot.lane.b32.xlu1 %v2540_v35, %s2244_s30 }
  0xbe   : > { %v835_v32 = vpop.permute.xlu0 %834 }
  0xbf   : > { %v837_v33 = vpop.permute.xlu1 %836  ;;  %881 = vst.msk [vmem:[#allocation2 + $0x10] sm:$0xff] %vm878_vm7, %v835_v32  ;;  %v234_v32 = vld [vmem:[%s2327_s28 + $0x1a8] sm:$0x3]  ;;  %s1929_s28 = sshll.u32 %s2295_s16, 11 }
  0xc0   : > { %882 = vst.msk [vmem:[#allocation2 + $0x18] sm:$0xff] %vm878_vm7, %v837_v33  ;;  %1140 = vrot.lane.b32.xlu0 %v2562_v12, %s2250_s19  ;;  %v1039_v33 = vrot.slane %v232_v51, 1  ;;  %s3016_s6 = scalar_lea.hbm %s3097_s2, %s1929_s28 }
  0xc1   : > { %483 = vrot.lane.b32.xlu1 %v2560_v58, %s2244_s30 }
  0xc2   : > { %v909_v19 = vpop.permute.xlu0 %908 }
  0xc3   : > { %v911_v34 = vpop.permute.xlu1 %910  ;;  %955 = vst.msk [vmem:[#allocation2 + $0x10] sm:$0xff] %vm952_vm8, %v909_v19  ;;  %v1040_v19 = vrot.slane %v233_v57, 1 }
  0xc4   : > { %956 = vst.msk [vmem:[#allocation2 + $0x18] sm:$0xff] %vm952_vm8, %v911_v34  ;;  %691 = vrot.lane.b32.xlu0 %v2545_v44, %s2245_s4  ;;  %v1042_v34 = vrot.slane %v234_v32, 1 }
  0xc5   : > { %693 = vrot.lane.b32.xlu1 %v2562_v12, %s2245_s4 }
  0xc6   : > { %v976_v35 = vpop.permute.xlu0 %975 }
  0xc7   : > { %v978_v55 = vpop.permute.xlu1 %977  ;;  %1022 = vst.msk [vmem:[#allocation2 + $0x10] sm:$0xff] %vm1019_vm9, %v976_v35 }
  0xc8   : > { %1023 = vst.msk [vmem:[#allocation2 + $0x18] sm:$0xff] %vm1019_vm9, %v978_v55  ;;  %773 = vrot.lane.b32.xlu0 %v2528_v29, %s2243_s29 }
  0xc9   : > { %775 = vrot.lane.b32.xlu1 %v2566_v43, %s2243_s29 }
  0xca   : > { %v1053_v36 = vpop.permute.xlu0 %1052 }
  0xcb   : > { %v1055_v39 = vpop.permute.xlu1 %1054  ;;  %1099 = vst.msk [vmem:[#allocation2 + $0x10] sm:$0xff] %vm1096_vm10, %v1053_v36  ;;  %v969_v36 = vpack.c.bf16 %v233_v57, %v232_v51 }
  0xcc   : > { %1100 = vst.msk [vmem:[#allocation2 + $0x18] sm:$0xff] %vm1096_vm10, %v1055_v39  ;;  %850 = vrot.lane.b32.xlu0 %v2560_v58, %s2246_s5  ;;  %v1113_v39 = vrot.slane %v232_v51, 2 }
  0xcd   : > { %852 = vrot.lane.b32.xlu1 %v2583_v25, %s2246_s5 }
  0xce   : > { %v1127_v44 = vpop.permute.xlu0 %1126 }
  0xcf   : > { %v470_v52 = vpop.permute.xlu1 %469  ;;  %1173 = vst.msk [vmem:[#allocation2 + $0x10] sm:$0xff] %vm1170_vm11, %v1127_v44  ;;  %v1041_v44 = vsel %vm316_vm1, %v1039_v33, %v1040_v19 }
  0xd0   : > { %514 = vst.msk [vmem:[#allocation2 + $0x20] sm:$0xff] %vm509_vm4, %v470_v52  ;;  %924 = vrot.lane.b32.xlu0 %v2562_v12, %s2247_s8  ;;  %v1043_v52 = vsel %vm316_vm1, %v1040_v19, %v1042_v34 }
  0xd1   : > { %926 = vrot.lane.b32.xlu1 %v2589_v11, %s2247_s8 }
  0xd2   : > { %v1129_v29 = vpop.permute.xlu0 %1128 }
  0xd3   : > { %v472_v3 = vpop.permute.xlu1 %471  ;;  %1174 = vst.msk [vmem:[#allocation2 + $0x18] sm:$0xff] %vm1170_vm11, %v1129_v29  ;;  %v1116_v29 = vrot.slane %v234_v32, 2 }
  0xd4   : > { %515 = vst.msk [vmem:[#allocation2 + $0x28] sm:$0xff] %vm509_vm4, %v472_v3  ;;  %991 = vrot.lane.b32.xlu0 %v2566_v43, %s2248_s11 }
  0xd5   : > { %993 = vrot.lane.b32.xlu1 %v2598_v40, %s2248_s11 }
  0xd6   : > { %v680_v58 = vpop.permute.xlu0 %679  ;;  %v1189_v61 = vld [vmem:[#allocation2 + $0x10] sm:$0xff] }
  0xd7   : > { %v682_v59 = vpop.permute.xlu1 %681  ;;  %724 = vst.msk [vmem:[#allocation2 + $0x20] sm:$0xff] %vm719_vm5, %v680_v58  ;;  %2054 = vmatprep.mubr.msk.bf16.mxu0 %vm1223_vm12, %v1189_v61 }
  0xd8   : > { %725 = vst.msk [vmem:[#allocation2 + $0x28] sm:$0xff] %vm719_vm5, %v682_v59  ;;  %1068 = vrot.lane.b32.xlu0 %v2583_v25, %s2249_s17 }
  0xd9   : > { %1070 = vrot.lane.b32.xlu1 %v2613_v0, %s2249_s17 }
  0xda   : > { %v762_v12 = vpop.permute.xlu0 %761  ;;  %v1190_v62 = vld [vmem:[#allocation2 + $0x18] sm:$0xff] }
  0xdb   : > { %v764_v43 = vpop.permute.xlu1 %763  ;;  %806 = vst.msk [vmem:[#allocation2 + $0x20] sm:$0xff] %vm801_vm6, %v762_v12  ;;  %2055 = vmatmul.mubr.msk.bf16.gmra.mrb[4].mxu0 %vm1223_vm12, %v1190_v62 }
  0xdc   : > { %807 = vst.msk [vmem:[#allocation2 + $0x28] sm:$0xff] %vm801_vm6, %v764_v43  ;;  %1142 = vrot.lane.b32.xlu0 %v2589_v11, %s2250_s19 }
  0xdd   : > { %485 = vrot.lane.b32.xlu1 %v2583_v25, %s2244_s30 }
  0xde   : > { %v839_v46 = vpop.permute.xlu0 %838 }
  0xdf   : > { %v841_v48 = vpop.permute.xlu1 %840  ;;  %883 = vst.msk [vmem:[#allocation2 + $0x20] sm:$0xff] %vm878_vm7, %v839_v46 }
  0xe0   : > { %884 = vst.msk [vmem:[#allocation2 + $0x28] sm:$0xff] %vm878_vm7, %v841_v48  ;;  %1144 = vrot.lane.b32.xlu0 %v2622_v14, %s2250_s19 }
  0xe1   : > { %487 = vrot.lane.b32.xlu1 %v2613_v0, %s2244_s30 }
  0xe2   : > { %v913_v49 = vpop.permute.xlu0 %912 }
  0xe3   : > { %v915_v50 = vpop.permute.xlu1 %914  ;;  %957 = vst.msk [vmem:[#allocation2 + $0x20] sm:$0xff] %vm952_vm8, %v913_v49 }
  0xe4   : > { %958 = vst.msk [vmem:[#allocation2 + $0x28] sm:$0xff] %vm952_vm8, %v915_v50  ;;  %695 = vrot.lane.b32.xlu0 %v2589_v11, %s2245_s4 }
  0xe5   : > { %697 = vrot.lane.b32.xlu1 %v2622_v14, %s2245_s4 }
  0xe6   : > { %v980_v25 = vpop.permute.xlu0 %979 }
  0xe7   : > { %v982_v2 = vpop.permute.xlu1 %981  ;;  %1024 = vst.msk [vmem:[#allocation2 + $0x20] sm:$0xff] %vm1019_vm9, %v980_v25 }
  0xe8   : > { %1025 = vst.msk [vmem:[#allocation2 + $0x28] sm:$0xff] %vm1019_vm9, %v982_v2  ;;  %777 = vrot.lane.b32.xlu0 %v2598_v40, %s2243_s29 }
  0xe9   : > { %779 = vrot.lane.b32.xlu1 %v2636_v28, %s2243_s29 }
  0xea   : > { %v1057_v6 = vpop.permute.xlu0 %1056 }
  0xeb   : > { %v1059_v1 = vpop.permute.xlu1 %1058  ;;  %1101 = vst.msk [vmem:[#allocation2 + $0x20] sm:$0xff] %vm1096_vm10, %v1057_v6 }
  0xec   : > { %1102 = vst.msk [vmem:[#allocation2 + $0x28] sm:$0xff] %vm1096_vm10, %v1059_v1  ;;  %854 = vrot.lane.b32.xlu0 %v2613_v0, %s2246_s5 }
  0xed   : > { %856 = vrot.lane.b32.xlu1 %v2651_v45, %s2246_s5 }
  0xee   : > { %v1131_v11 = vpop.permute.xlu0 %1130 }
  0xef   : > { %v474_v42 = vpop.permute.xlu1 %473  ;;  %1175 = vst.msk [vmem:[#allocation2 + $0x20] sm:$0xff] %vm1170_vm11, %v1131_v11 }
  0xf0   : > { %516 = vst.msk [vmem:[#allocation2 + $0x30] sm:$0xff] %vm509_vm4, %v474_v42  ;;  %928 = vrot.lane.b32.xlu0 %v2622_v14, %s2247_s8 }
  0xf1   : > { %930 = vrot.lane.b32.xlu1 %v2655_v60, %s2247_s8 }
  0xf2   : > { %v1133_v40 = vpop.permute.xlu0 %1132 }
  0xf3   : > { %v476_v8 = vpop.permute.xlu1 %475  ;;  %1176 = vst.msk [vmem:[#allocation2 + $0x28] sm:$0xff] %vm1170_vm11, %v1133_v40 }
  0xf4   : > { %517 = vst.msk [vmem:[#allocation2 + $0x38] sm:$0xff] %vm509_vm4, %v476_v8  ;;  %995 = vrot.lane.b32.xlu0 %v2636_v28, %s2248_s11 }
  0xf5   : > { %997 = vrot.lane.b32.xlu1 %v2661_v63, %s2248_s11 }
  0xf6   : > { %v684_v0 = vpop.permute.xlu0 %683  ;;  %v1191_v9 = vld [vmem:[#allocation2 + $0x20] sm:$0xff] }
  0xf7   : > { %v686_v4 = vpop.permute.xlu1 %685  ;;  %726 = vst.msk [vmem:[#allocation2 + $0x30] sm:$0xff] %vm719_vm5, %v684_v0  ;;  %2058 = vmatprep.mubr.msk.bf16.mxu0 %vm1223_vm12, %v1191_v9 }
  0xf8   : > { %727 = vst.msk [vmem:[#allocation2 + $0x38] sm:$0xff] %vm719_vm5, %v686_v4  ;;  %1072 = vrot.lane.b32.xlu0 %v2651_v45, %s2249_s17 }
  0xf9   : > { %1074 = vrot.lane.b32.xlu1 %v2675_v7, %s2249_s17 }
  0xfa   : > { %v766_v14 = vpop.permute.xlu0 %765  ;;  %v1192_v16 = vld [vmem:[#allocation2 + $0x28] sm:$0xff] }
  0xfb   : > { %v768_v28 = vpop.permute.xlu1 %767  ;;  %808 = vst.msk [vmem:[#allocation2 + $0x30] sm:$0xff] %vm801_vm6, %v766_v14  ;;  %2059 = vmatmul.mubr.msk.bf16.gmra.mrb[8].mxu0 %vm1223_vm12, %v1192_v16 }
  0xfc   : > { %809 = vst.msk [vmem:[#allocation2 + $0x38] sm:$0xff] %vm801_vm6, %v768_v28  ;;  %1146 = vrot.lane.b32.xlu0 %v2655_v60, %s2250_s19 }
  0xfd   : > { %489 = vrot.lane.b32.xlu1 %v2651_v45, %s2244_s30 }
  0xfe   : > { %v843_v5 = vpop.permute.xlu0 %842 }
  0xff   : > { %v845_v10 = vpop.permute.xlu1 %844  ;;  %885 = vst.msk [vmem:[#allocation2 + $0x30] sm:$0xff] %vm878_vm7, %v843_v5 }
 0x100   : > { %886 = vst.msk [vmem:[#allocation2 + $0x38] sm:$0xff] %vm878_vm7, %v845_v10  ;;  %1148 = vrot.lane.b32.xlu0 %v2681_v15, %s2250_s19 }
 0x101   : > { %491 = vrot.lane.b32.xlu1 %v2675_v7, %s2244_s30 }
 0x102   : > { %v917_v22 = vpop.permute.xlu0 %916 }
 0x103   : > { %v919_v45 = vpop.permute.xlu1 %918  ;;  %959 = vst.msk [vmem:[#allocation2 + $0x30] sm:$0xff] %vm952_vm8, %v917_v22 }
 0x104   : > { %960 = vst.msk [vmem:[#allocation2 + $0x38] sm:$0xff] %vm952_vm8, %v919_v45  ;;  %699 = vrot.lane.b32.xlu0 %v2655_v60, %s2245_s4  ;;  %v828_v60 = vpack.c.bf16 %v825_v54, %v823_v27 }
 0x105   : > { %701 = vrot.lane.b32.xlu1 %v2681_v15, %s2245_s4 }
 0x106   : > { %v984_v47 = vpop.permute.xlu0 %983 }
 0x107   : > { %v986_v24 = vpop.permute.xlu1 %985  ;;  %1026 = vst.msk [vmem:[#allocation2 + $0x30] sm:$0xff] %vm1019_vm9, %v984_v47 }
 0x108   : > { %1027 = vst.msk [vmem:[#allocation2 + $0x38] sm:$0xff] %vm1019_vm9, %v986_v24  ;;  %781 = vrot.lane.b32.xlu0 %v2661_v63, %s2243_s29  ;;  %v902_v63 = vpack.c.bf16 %v899_v56, %v897_v17 }
 0x109   : > { %783 = vrot.lane.b32.xlu1 %v736_v53, %s2243_s29  ;;  %s1725_s29 = sshll.u32 %s2993_s27, 4  ;;  %s3018_s29 = int_to_ptr.vmem [resolvable:$true] %s1725_s29 }
 0x10a   : > { %v1061_v31 = vpop.permute.xlu0 %1060  ;;  %p2154_p0 = scmp.lt.s32.totalorder %s3018_s29, %s2152_s10 }
 0x10b   : > { %v1063_v13 = vpop.permute.xlu1 %1062  ;;  %1103 = vst.msk [vmem:[#allocation2 + $0x30] sm:$0xff] %vm1096_vm10, %v1061_v31 }
 0x10c   : > { %1104 = vst.msk [vmem:[#allocation2 + $0x38] sm:$0xff] %vm1096_vm10, %v1063_v13  ;;  %858 = vrot.lane.b32.xlu0 %v2675_v7, %s2246_s5  ;;  %v1114_v7 = vrot.slane %v233_v57, 2 }
 0x10d   : > { %860 = vrot.lane.b32.xlu1 %v828_v60, %s2246_s5 }
 0x10e   : > { %v1135_v35 = vpop.permute.xlu0 %1134  ;;  %v1115_v59 = vsel %vm526_vm2, %v1113_v39, %v1114_v7  ;;  %v1117_v61 = vsel %vm526_vm2, %v1114_v7, %v1116_v29 }
 0x10f   : > { %v478_v55 = vpop.permute.xlu1 %477  ;;  %1177 = vst.msk [vmem:[#allocation2 + $0x30] sm:$0xff] %vm1170_vm11, %v1135_v35  ;;  %v1120_v46 = vpack.c.bf16 %v1117_v61, %v1115_v59 }
 0x110   : > { %518 = vst.msk [vmem:[#allocation2 + $0x40] sm:$0xff] %vm509_vm4, %v478_v55  ;;  %932 = vrot.lane.b32.xlu0 %v2681_v15, %s2247_s8  ;;  %v1046_v15 = vpack.c.bf16 %v1043_v52, %v1041_v44 }
 0x111   : > { %934 = vrot.lane.b32.xlu1 %v902_v63, %s2247_s8  ;;  %s2147_s8 = scalar_lea.vmem %s3018_s29, 2048 }
 0x112   : > { %v1137_v3 = vpop.permute.xlu0 %1136  ;;  %p2148_p11 = scmp.ne.s32.totalorder %s3018_s29, %s2147_s8 }
 0x113   : > { %v480_v58 = vpop.permute.xlu1 %479  ;;  %1178 = vst.msk [vmem:[#allocation2 + $0x38] sm:$0xff] %vm1170_vm11, %v1137_v3 }
 0x114   : > { %519 = vst.msk [vmem:[#allocation2 + $0x48] sm:$0xff] %vm509_vm4, %v480_v58  ;;  %999 = vrot.lane.b32.xlu0 %v736_v53, %s2248_s11  ;;  %p2149_p12 = pnand %p2148_p11, %p2312_p5 }
 0x115   : > { %1001 = vrot.lane.b32.xlu1 %v969_v36, %s2248_s11  ;;  %s2153_s11 = scalar_lea.vmem %s2152_s10, 4096 }
 0x116   : > { %v688_v12 = vpop.permute.xlu0 %687  ;;  %v1193_v62 = vld [vmem:[#allocation2 + $0x30] sm:$0xff]  ;;  %p2150_p13 = pneg %p2149_p12  ;;  %p2155_p1 = scmp.lt.s32.totalorder %s2153_s11, %s2147_s8 }
 0x117   : > { %v690_v43 = vpop.permute.xlu1 %689  ;;  %728 = vst.msk [vmem:[#allocation2 + $0x40] sm:$0xff] %vm719_vm5, %v688_v12  ;;  %2062 = vmatprep.mubr.msk.bf16.mxu0 %vm1223_vm12, %v1193_v62 }
 0x118   : > { %729 = vst.msk [vmem:[#allocation2 + $0x48] sm:$0xff] %vm719_vm5, %v690_v43  ;;  %1076 = vrot.lane.b32.xlu0 %v828_v60, %s2249_s17  ;;  %p2156_p2 = por %p2155_p1, %p2154_p0 }
 0x119   : > { %1078 = vrot.lane.b32.xlu1 %v1046_v15, %s2249_s17 }
 0x11a   : > { %v770_v48 = vpop.permute.xlu0 %769  ;;  %v1194_v50 = vld [vmem:[#allocation2 + $0x38] sm:$0xff]  ;;  %p2157_p3 = pnand %p2156_p2, %p2150_p13 }
 0x11b   : > { %v772_v49 = vpop.permute.xlu1 %771  ;;  %810 = vst.msk [vmem:[#allocation2 + $0x40] sm:$0xff] %vm801_vm6, %v770_v48  ;;  %2063 = vmatmul.mubr.msk.bf16.gmra.mrb[12].mxu0 %vm1223_vm12, %v1194_v50 }
 0x11c   : > { %811 = vst.msk [vmem:[#allocation2 + $0x48] sm:$0xff] %vm801_vm6, %v772_v49  ;;  %1150 = vrot.lane.b32.xlu0 %v902_v63, %s2250_s19 }
 0x11d   : > { %1152 = vrot.lane.b32.xlu1 %v1120_v46, %s2250_s19 }
 0x11e   : > { %v847_v25 = vpop.permute.xlu0 %846 }
 0x11f   : > { %v849_v2 = vpop.permute.xlu1 %848  ;;  %887 = vst.msk [vmem:[#allocation2 + $0x40] sm:$0xff] %vm878_vm7, %v847_v25 }
 0x120   : > { %888 = vst.msk [vmem:[#allocation2 + $0x48] sm:$0xff] %vm878_vm7, %v849_v2 }
 0x122   : > { %v921_v6 = vpop.permute.xlu0 %920 }
 0x123   : > { %v923_v1 = vpop.permute.xlu1 %922  ;;  %961 = vst.msk [vmem:[#allocation2 + $0x40] sm:$0xff] %vm952_vm8, %v921_v6 }
 0x124   : > { %962 = vst.msk [vmem:[#allocation2 + $0x48] sm:$0xff] %vm952_vm8, %v923_v1 }
 0x126   : > { %v988_v11 = vpop.permute.xlu0 %987 }
 0x127   : > { %v990_v42 = vpop.permute.xlu1 %989  ;;  %1028 = vst.msk [vmem:[#allocation2 + $0x40] sm:$0xff] %vm1019_vm9, %v988_v11 }
 0x128   : > { %1029 = vst.msk [vmem:[#allocation2 + $0x48] sm:$0xff] %vm1019_vm9, %v990_v42 }
 0x12a   : > { %v1065_v40 = vpop.permute.xlu0 %1064 }
 0x12b   : > { %v1067_v8 = vpop.permute.xlu1 %1066  ;;  %1105 = vst.msk [vmem:[#allocation2 + $0x40] sm:$0xff] %vm1096_vm10, %v1065_v40 }
 0x12c   : > { %1106 = vst.msk [vmem:[#allocation2 + $0x48] sm:$0xff] %vm1096_vm10, %v1067_v8 }
 0x12e   : > { %v1139_v0 = vpop.permute.xlu0 %1138 }
 0x12f   : > { %v482_v4 = vpop.permute.xlu1 %481  ;;  %1179 = vst.msk [vmem:[#allocation2 + $0x40] sm:$0xff] %vm1170_vm11, %v1139_v0 }
 0x130   : > { %520 = vst.msk [vmem:[#allocation2 + $0x50] sm:$0xff] %vm509_vm4, %v482_v4 }
 0x132   : > { %v1141_v9 = vpop.permute.xlu0 %1140 }
 0x133   : > { %v484_v14 = vpop.permute.xlu1 %483  ;;  %1180 = vst.msk [vmem:[#allocation2 + $0x48] sm:$0xff] %vm1170_vm11, %v1141_v9 }
 0x134   : > { %521 = vst.msk [vmem:[#allocation2 + $0x58] sm:$0xff] %vm509_vm4, %v484_v14 }
 0x136   : > { %v692_v28 = vpop.permute.xlu0 %691  ;;  %v1195_v5 = vld [vmem:[#allocation2 + $0x40] sm:$0xff] }
 0x137   : > { %v694_v16 = vpop.permute.xlu1 %693  ;;  %730 = vst.msk [vmem:[#allocation2 + $0x50] sm:$0xff] %vm719_vm5, %v692_v28  ;;  %2066 = vmatprep.mubr.msk.bf16.mxu1 %vm1223_vm12, %v1195_v5 }
 0x138   : > { %731 = vst.msk [vmem:[#allocation2 + $0x58] sm:$0xff] %vm719_vm5, %v694_v16 }
 0x13a   : > { %v774_v10 = vpop.permute.xlu0 %773  ;;  %v1196_v26 = vld [vmem:[#allocation2 + $0x48] sm:$0xff] }
 0x13b   : > { %v776_v37 = vpop.permute.xlu1 %775  ;;  %812 = vst.msk [vmem:[#allocation2 + $0x50] sm:$0xff] %vm801_vm6, %v774_v10  ;;  %2067 = vmatmul.mubr.msk.bf16.vlgmr.msra.gmra.mrb[0].mxu1 %vm1223_vm12, %v1196_v26 }
 0x13c   : > { %813 = vst.msk [vmem:[#allocation2 + $0x58] sm:$0xff] %vm801_vm6, %v776_v37 }
 0x13e   : > { %v851_v38 = vpop.permute.xlu0 %850 }
 0x13f   : > { %v853_v18 = vpop.permute.xlu1 %852  ;;  %889 = vst.msk [vmem:[#allocation2 + $0x50] sm:$0xff] %vm878_vm7, %v851_v38 }
 0x140   : > { %890 = vst.msk [vmem:[#allocation2 + $0x58] sm:$0xff] %vm878_vm7, %v853_v18 }
 0x142   : > { %v925_v20 = vpop.permute.xlu0 %924 }
 0x143   : > { %v927_v21 = vpop.permute.xlu1 %926  ;;  %963 = vst.msk [vmem:[#allocation2 + $0x50] sm:$0xff] %vm952_vm8, %v925_v20 }
 0x144   : > { %964 = vst.msk [vmem:[#allocation2 + $0x58] sm:$0xff] %vm952_vm8, %v927_v21 }
 0x146   : > { %v992_v22 = vpop.permute.xlu0 %991 }
 0x147   : > { %v994_v45 = vpop.permute.xlu1 %993  ;;  %1030 = vst.msk [vmem:[#allocation2 + $0x50] sm:$0xff] %vm1019_vm9, %v992_v22 }
 0x148   : > { %1031 = vst.msk [vmem:[#allocation2 + $0x58] sm:$0xff] %vm1019_vm9, %v994_v45 }
 0x14a   : > { %v1069_v53 = vpop.permute.xlu0 %1068 }
 0x14b   : > { %v1071_v23 = vpop.permute.xlu1 %1070  ;;  %1107 = vst.msk [vmem:[#allocation2 + $0x50] sm:$0xff] %vm1096_vm10, %v1069_v53 }
 0x14c   : > { %1108 = vst.msk [vmem:[#allocation2 + $0x58] sm:$0xff] %vm1096_vm10, %v1071_v23 }
 0x14e   : > { %v1143_v41 = vpop.permute.xlu0 %1142 }
 0x14f   : > { %v486_v27 = vpop.permute.xlu1 %485  ;;  %1181 = vst.msk [vmem:[#allocation2 + $0x50] sm:$0xff] %vm1170_vm11, %v1143_v41 }
 0x150   : > { %522 = vst.msk [vmem:[#allocation2 + $0x60] sm:$0xff] %vm509_vm4, %v486_v27 }
 0x152   : > { %v1145_v54 = vpop.permute.xlu0 %1144 }
 0x153   : > { %v488_v30 = vpop.permute.xlu1 %487  ;;  %1182 = vst.msk [vmem:[#allocation2 + $0x58] sm:$0xff] %vm1170_vm11, %v1145_v54 }
 0x154   : > { %523 = vst.msk [vmem:[#allocation2 + $0x68] sm:$0xff] %vm509_vm4, %v488_v30 }
 0x156   : > { %v696_v47 = vpop.permute.xlu0 %695  ;;  %v1197_v60 = vld [vmem:[#allocation2 + $0x50] sm:$0xff] }
 0x157   : > { %v698_v24 = vpop.permute.xlu1 %697  ;;  %732 = vst.msk [vmem:[#allocation2 + $0x60] sm:$0xff] %vm719_vm5, %v696_v47  ;;  %2070 = vmatprep.mubr.msk.bf16.mxu1 %vm1223_vm12, %v1197_v60 }
 0x158   : > { %733 = vst.msk [vmem:[#allocation2 + $0x68] sm:$0xff] %vm719_vm5, %v698_v24 }
 0x15a   : > { %v778_v17 = vpop.permute.xlu0 %777  ;;  %v1198_v31 = vld [vmem:[#allocation2 + $0x58] sm:$0xff] }
 0x15b   : > { %v780_v56 = vpop.permute.xlu1 %779  ;;  %814 = vst.msk [vmem:[#allocation2 + $0x60] sm:$0xff] %vm801_vm6, %v778_v17  ;;  %2071 = vmatmul.mubr.msk.bf16.gmra.mrb[4].mxu1 %vm1223_vm12, %v1198_v31 }
 0x15c   : > { %815 = vst.msk [vmem:[#allocation2 + $0x68] sm:$0xff] %vm801_vm6, %v780_v56 }
 0x15e   : > { %v855_v13 = vpop.permute.xlu0 %854 }
 0x15f   : > { %v857_v51 = vpop.permute.xlu1 %856  ;;  %891 = vst.msk [vmem:[#allocation2 + $0x60] sm:$0xff] %vm878_vm7, %v855_v13 }
 0x160   : > { %892 = vst.msk [vmem:[#allocation2 + $0x68] sm:$0xff] %vm878_vm7, %v857_v51 }
 0x162   : > { %v929_v57 = vpop.permute.xlu0 %928 }
 0x163   : > { %v931_v32 = vpop.permute.xlu1 %930  ;;  %965 = vst.msk [vmem:[#allocation2 + $0x60] sm:$0xff] %vm952_vm8, %v929_v57 }
 0x164   : > { %966 = vst.msk [vmem:[#allocation2 + $0x68] sm:$0xff] %vm952_vm8, %v931_v32 }
 0x166   : > { %v996_v63 = vpop.permute.xlu0 %995 }
 0x167   : > { %v998_v33 = vpop.permute.xlu1 %997  ;;  %1032 = vst.msk [vmem:[#allocation2 + $0x60] sm:$0xff] %vm1019_vm9, %v996_v63 }
 0x168   : > { %1033 = vst.msk [vmem:[#allocation2 + $0x68] sm:$0xff] %vm1019_vm9, %v998_v33 }
 0x16a   : > { %v1073_v19 = vpop.permute.xlu0 %1072 }
 0x16b   : > { %v1075_v34 = vpop.permute.xlu1 %1074  ;;  %1109 = vst.msk [vmem:[#allocation2 + $0x60] sm:$0xff] %vm1096_vm10, %v1073_v19 }
 0x16c   : > { %1110 = vst.msk [vmem:[#allocation2 + $0x68] sm:$0xff] %vm1096_vm10, %v1075_v34 }
 0x16e   : > { %v1147_v35 = vpop.permute.xlu0 %1146 }
 0x16f   : > { %v490_v55 = vpop.permute.xlu1 %489  ;;  %1183 = vst.msk [vmem:[#allocation2 + $0x60] sm:$0xff] %vm1170_vm11, %v1147_v35 }
 0x170   : > { %524 = vst.msk [vmem:[#allocation2 + $0x70] sm:$0xff] %vm509_vm4, %v490_v55 }
 0x172   : > { %v1149_v36 = vpop.permute.xlu0 %1148 }
 0x173   : > { %v492_v39 = vpop.permute.xlu1 %491  ;;  %1184 = vst.msk [vmem:[#allocation2 + $0x68] sm:$0xff] %vm1170_vm11, %v1149_v36 }
 0x174   : > { %525 = vst.msk [vmem:[#allocation2 + $0x78] sm:$0xff] %vm509_vm4, %v492_v39 }
 0x176   : > { %v700_v7 = vpop.permute.xlu0 %699  ;;  %v1199_v52 = vld [vmem:[#allocation2 + $0x60] sm:$0xff] }
 0x177   : > { %v702_v44 = vpop.permute.xlu1 %701  ;;  %734 = vst.msk [vmem:[#allocation2 + $0x70] sm:$0xff] %vm719_vm5, %v700_v7  ;;  %2074 = vmatprep.mubr.msk.bf16.mxu1 %vm1223_vm12, %v1199_v52 }
 0x178   : > { %735 = vst.msk [vmem:[#allocation2 + $0x78] sm:$0xff] %vm719_vm5, %v702_v44 }
 0x17a   : > { %v782_v29 = vpop.permute.xlu0 %781  ;;  %v1200_v58 = vld [vmem:[#allocation2 + $0x68] sm:$0xff] }
 0x17b   : > { %v784_v3 = vpop.permute.xlu1 %783  ;;  %816 = vst.msk [vmem:[#allocation2 + $0x70] sm:$0xff] %vm801_vm6, %v782_v29  ;;  %2075 = vmatmul.mubr.msk.bf16.gmra.mrb[8].mxu1 %vm1223_vm12, %v1200_v58 }
 0x17c   : > { %817 = vst.msk [vmem:[#allocation2 + $0x78] sm:$0xff] %vm801_vm6, %v784_v3 }
 0x17e   : > { %v859_v15 = vpop.permute.xlu0 %858 }
 0x17f   : > { %v861_v59 = vpop.permute.xlu1 %860  ;;  %893 = vst.msk [vmem:[#allocation2 + $0x70] sm:$0xff] %vm878_vm7, %v859_v15 }
 0x180   : > { %894 = vst.msk [vmem:[#allocation2 + $0x78] sm:$0xff] %vm878_vm7, %v861_v59 }
 0x182   : > { %v933_v61 = vpop.permute.xlu0 %932 }
 0x183   : > { %v935_v12 = vpop.permute.xlu1 %934  ;;  %967 = vst.msk [vmem:[#allocation2 + $0x70] sm:$0xff] %vm952_vm8, %v933_v61 }
 0x184   : > { %968 = vst.msk [vmem:[#allocation2 + $0x78] sm:$0xff] %vm952_vm8, %v935_v12 }
 0x186   : > { %v1000_v43 = vpop.permute.xlu0 %999 }
 0x187   : > { %v1002_v62 = vpop.permute.xlu1 %1001  ;;  %1034 = vst.msk [vmem:[#allocation2 + $0x70] sm:$0xff] %vm1019_vm9, %v1000_v43 }
 0x188   : > { %1035 = vst.msk [vmem:[#allocation2 + $0x78] sm:$0xff] %vm1019_vm9, %v1002_v62 }
 0x18a   : > { %v1077_v46 = vpop.permute.xlu0 %1076 }
 0x18b   : > { %v1079_v48 = vpop.permute.xlu1 %1078  ;;  %1111 = vst.msk [vmem:[#allocation2 + $0x70] sm:$0xff] %vm1096_vm10, %v1077_v46 }
 0x18c   : > { %1112 = vst.msk [vmem:[#allocation2 + $0x78] sm:$0xff] %vm1096_vm10, %v1079_v48 }
 0x18e   : > { %v1151_v49 = vpop.permute.xlu0 %1150  ;;  %v2052_v50 = vpop.f32.mrb[0].mxu0 }
 0x18f   : > { %1185 = vst.msk [vmem:[#allocation2 + $0x70] sm:$0xff] %vm1170_vm11, %v1151_v49  ;;  %v1153_v25 = vpop.permute.xlu1 %1152  ;;  %v1310_v2 = vpop.f32.mrb[1].mxu0  ;;  %v1636_v4 = vmul.f32 %v2052_v50, %v2052_v50 }
 0x190   : > { %1186 = vst.msk [vmem:[#allocation2 + $0x78] sm:$0xff] %vm1170_vm11, %v1153_v25  ;;  %v2053_v6 = vpop.f32.mrb[2].mxu0  ;;  %v1634_v42 = vmul.f32 %v1310_v2, %v1310_v2 }
 0x191   : > { %v1938_v1 = vpack.c.bf16 %v2053_v6, %v2052_v50  ;;  %v1313_v11 = vpop.f32.mrb[3].mxu0  ;;  %v1637_v28 = vmul.f32 %v2053_v6, %v2053_v6 }
 0x192   : > { %v1933_v40 = vpack.c.bf16 %v1313_v11, %v1310_v2  ;;  %v1597_v8 = vadd.f32 %v1313_v11, %v1310_v2  ;;  %v1635_v0 = vmul.f32 %v1313_v11, %v1313_v11 }
 0x193   : > { %2010 = vst [vmem:[%s2993_s27 + $0x8] sm:$0xff] %v1938_v1  }
 0x194   : > { %1934 = vst [vmem:[%s2993_s27] sm:$0xff] %v1933_v40   ;;  %v1598_v9 = vadd.f32 %v2052_v50, %v1597_v8  ;;  %v1666_v14 = vadd.f32 %v1635_v0, %v1634_v42 }
 0x196   : > { %v1667_v16 = vadd.f32 %v1666_v14, %v1636_v4  ;;  %v1201_v5 = vld [vmem:[#allocation2 + $0x70] sm:$0xff]  ;;  %v1599_v10 = vadd.f32 %v2053_v6, %v1598_v9 }
 0x197   : > { %2078 = vmatprep.mubr.msk.bf16.mxu1 %vm1223_vm12, %v1201_v5  ;;  %v1202_v37 = vld [vmem:[#allocation2 + $0x78] sm:$0xff] }
 0x198   : > { %2079 = vmatmul.mubr.msk.bf16.gmra.mrb[12].mxu1 %vm1223_vm12, %v1202_v37  ;;  %v1668_v26 = vadd.f32 %v1667_v16, %v1637_v28 }
 0x1ae   : > { %v2056_v38 = vpop.f32.mrb[4].mxu0 }
 0x1af   : > { %v1326_v18 = vpop.f32.mrb[5].mxu0  ;;  %v1640_v30 = vmul.f32 %v2056_v38, %v2056_v38 }
 0x1b0   : > { %v1600_v20 = vadd.f32 %v1599_v10, %v1326_v18  ;;  %v1638_v21 = vmul.f32 %v1326_v18, %v1326_v18  ;;  %v2057_v22 = vpop.f32.mrb[6].mxu0 }
 0x1b1   : > { %v1948_v45 = vpack.c.bf16 %v2057_v22, %v2056_v38  ;;  %v1329_v53 = vpop.f32.mrb[7].mxu0  ;;  %v1641_v60 = vmul.f32 %v2057_v22, %v2057_v22 }
 0x1b2   : > { %v1669_v23 = vadd.f32 %v1668_v26, %v1638_v21  ;;  %v1943_v41 = vpack.c.bf16 %v1329_v53, %v1326_v18  ;;  %v1601_v27 = vadd.f32 %v1600_v20, %v1329_v53  ;;  %v1639_v54 = vmul.f32 %v1329_v53, %v1329_v53 }
 0x1b3   : > { %2012 = vst [vmem:[%s2993_s27 + $0x18] sm:$0xff] %v1948_v45  }
 0x1b4   : > { %2011 = vst [vmem:[%s2993_s27 + $0x10] sm:$0xff] %v1943_v41   ;;  %v1602_v47 = vadd.f32 %v2056_v38, %v1601_v27  ;;  %v1670_v24 = vadd.f32 %v1669_v23, %v1639_v54 }
 0x1b6   : > { %v1671_v17 = vadd.f32 %v1670_v24, %v1640_v30  ;;  %v1603_v56 = vadd.f32 %v2057_v22, %v1602_v47 }
 0x1b8   : > { %v1672_v31 = vadd.f32 %v1671_v17, %v1641_v60 }
 0x1ce   : > { %v2060_v13 = vpop.f32.mrb[8].mxu0 }
 0x1cf   : > { %v1342_v51 = vpop.f32.mrb[9].mxu0  ;;  %v1644_v39 = vmul.f32 %v2060_v13, %v2060_v13 }
 0x1d0   : > { %v1604_v57 = vadd.f32 %v1603_v56, %v1342_v51  ;;  %v1642_v32 = vmul.f32 %v1342_v51, %v1342_v51  ;;  %v2061_v63 = vpop.f32.mrb[10].mxu0 }
 0x1d1   : > { %v1958_v33 = vpack.c.bf16 %v2061_v63, %v2060_v13  ;;  %v1345_v19 = vpop.f32.mrb[11].mxu0  ;;  %v1645_v52 = vmul.f32 %v2061_v63, %v2061_v63 }
 0x1d2   : > { %v1673_v34 = vadd.f32 %v1672_v31, %v1642_v32  ;;  %v1953_v35 = vpack.c.bf16 %v1345_v19, %v1342_v51  ;;  %v1605_v55 = vadd.f32 %v1604_v57, %v1345_v19  ;;  %v1643_v36 = vmul.f32 %v1345_v19, %v1345_v19 }
 0x1d3   : > { %2014 = vst [vmem:[%s2993_s27 + $0x28] sm:$0xff] %v1958_v33  }
 0x1d4   : > { %2013 = vst [vmem:[%s2993_s27 + $0x20] sm:$0xff] %v1953_v35   ;;  %v1606_v7 = vadd.f32 %v2060_v13, %v1605_v55  ;;  %v1674_v44 = vadd.f32 %v1673_v34, %v1643_v36 }
 0x1d6   : > { %v1675_v29 = vadd.f32 %v1674_v44, %v1644_v39  ;;  %v1607_v3 = vadd.f32 %v2061_v63, %v1606_v7 }
 0x1d8   : > { %v1676_v58 = vadd.f32 %v1675_v29, %v1645_v52 }
 0x1ee   : > { %v2064_v15 = vpop.f32.mrb[12].mxu0 }
 0x1ef   : > { %v1358_v59 = vpop.f32.mrb[13].mxu0  ;;  %v1648_v2 = vmul.f32 %v2064_v15, %v2064_v15 }
 0x1f0   : > { %v1608_v61 = vadd.f32 %v1607_v3, %v1358_v59  ;;  %v1646_v12 = vmul.f32 %v1358_v59, %v1358_v59  ;;  %v2065_v43 = vpop.f32.mrb[14].mxu0 }
 0x1f1   : > { %v1968_v62 = vpack.c.bf16 %v2065_v43, %v2064_v15  ;;  %v1361_v46 = vpop.f32.mrb[15].mxu0  ;;  %v1649_v11 = vmul.f32 %v2065_v43, %v2065_v43 }
 0x1f2   : > { %v1677_v48 = vadd.f32 %v1676_v58, %v1646_v12  ;;  %v1963_v49 = vpack.c.bf16 %v1361_v46, %v1358_v59  ;;  %v1609_v50 = vadd.f32 %v1608_v61, %v1361_v46  ;;  %v1647_v25 = vmul.f32 %v1361_v46, %v1361_v46 }
 0x1f3   : > { %2016 = vst [vmem:[%s2993_s27 + $0x38] sm:$0xff] %v1968_v62  }
 0x1f4   : > { %2015 = vst [vmem:[%s2993_s27 + $0x30] sm:$0xff] %v1963_v49   ;;  %v1610_v6 = vadd.f32 %v2064_v15, %v1609_v50  ;;  %v1678_v1 = vadd.f32 %v1677_v48, %v1647_v25 }
 0x1f6   : > { %v1679_v42 = vadd.f32 %v1678_v1, %v1648_v2  ;;  %v1611_v40 = vadd.f32 %v2065_v43, %v1610_v6 }
 0x1f8   : > { %v1680_v8 = vadd.f32 %v1679_v42, %v1649_v11 }
 0x20e   : > { %v2068_v0 = vpop.f32.mrb[0].mxu1 }
 0x20f   : > { %v1374_v4 = vpop.f32.mrb[1].mxu1  ;;  %v1652_v18 = vmul.f32 %v2068_v0, %v2068_v0 }
 0x210   : > { %v1612_v9 = vadd.f32 %v1611_v40, %v1374_v4  ;;  %v1650_v14 = vmul.f32 %v1374_v4, %v1374_v4  ;;  %v2069_v28 = vpop.f32.mrb[2].mxu1 }
 0x211   : > { %v1978_v16 = vpack.c.bf16 %v2069_v28, %v2068_v0  ;;  %v1377_v5 = vpop.f32.mrb[3].mxu1  ;;  %v1653_v22 = vmul.f32 %v2069_v28, %v2069_v28 }
 0x212   : > { %v1681_v10 = vadd.f32 %v1680_v8, %v1650_v14  ;;  %v1973_v37 = vpack.c.bf16 %v1377_v5, %v1374_v4  ;;  %v1613_v26 = vadd.f32 %v1612_v9, %v1377_v5  ;;  %v1651_v38 = vmul.f32 %v1377_v5, %v1377_v5 }
 0x213   : > { %2018 = vst [vmem:[%s2993_s27 + $0x48] sm:$0xff] %v1978_v16  }
 0x214   : > { %2017 = vst [vmem:[%s2993_s27 + $0x40] sm:$0xff] %v1973_v37   ;;  %v1614_v20 = vadd.f32 %v2068_v0, %v1613_v26  ;;  %v1682_v21 = vadd.f32 %v1681_v10, %v1651_v38 }
 0x216   : > { %v1683_v45 = vadd.f32 %v1682_v21, %v1652_v18  ;;  %v1615_v53 = vadd.f32 %v2069_v28, %v1614_v20 }
 0x218   : > { %v1684_v23 = vadd.f32 %v1683_v45, %v1653_v22 }
 0x22e   : > { %v2072_v41 = vpop.f32.mrb[4].mxu1 }
 0x22f   : > { %v1390_v27 = vpop.f32.mrb[5].mxu1  ;;  %v1656_v51 = vmul.f32 %v2072_v41, %v2072_v41 }
 0x230   : > { %v1616_v54 = vadd.f32 %v1615_v53, %v1390_v27  ;;  %v1654_v30 = vmul.f32 %v1390_v27, %v1390_v27  ;;  %v2073_v47 = vpop.f32.mrb[6].mxu1 }
 0x231   : > { %v1988_v24 = vpack.c.bf16 %v2073_v47, %v2072_v41  ;;  %v1393_v60 = vpop.f32.mrb[7].mxu1  ;;  %v1657_v63 = vmul.f32 %v2073_v47, %v2073_v47 }
 0x232   : > { %v1685_v17 = vadd.f32 %v1684_v23, %v1654_v30  ;;  %v1983_v56 = vpack.c.bf16 %v1393_v60, %v1390_v27  ;;  %v1617_v31 = vadd.f32 %v1616_v54, %v1393_v60  ;;  %v1655_v13 = vmul.f32 %v1393_v60, %v1393_v60 }
 0x233   : > { %2020 = vst [vmem:[%s2993_s27 + $0x58] sm:$0xff] %v1988_v24  }
 0x234   : > { %2019 = vst [vmem:[%s2993_s27 + $0x50] sm:$0xff] %v1983_v56   ;;  %v1618_v57 = vadd.f32 %v2072_v41, %v1617_v31  ;;  %v1686_v32 = vadd.f32 %v1685_v17, %v1655_v13 }
 0x236   : > { %v1687_v33 = vadd.f32 %v1686_v32, %v1656_v51  ;;  %v1619_v19 = vadd.f32 %v2073_v47, %v1618_v57 }
 0x238   : > { %v1688_v34 = vadd.f32 %v1687_v33, %v1657_v63 }
 0x24e   : > { %v2076_v35 = vpop.f32.mrb[8].mxu1 }
 0x24f   : > { %v1406_v55 = vpop.f32.mrb[9].mxu1  ;;  %v1660_v59 = vmul.f32 %v2076_v35, %v2076_v35 }
 0x250   : > { %v1620_v36 = vadd.f32 %v1619_v19, %v1406_v55  ;;  %v1658_v39 = vmul.f32 %v1406_v55, %v1406_v55  ;;  %v2077_v7 = vpop.f32.mrb[10].mxu1 }
 0x251   : > { %v1998_v44 = vpack.c.bf16 %v2077_v7, %v2076_v35  ;;  %v1409_v52 = vpop.f32.mrb[11].mxu1  ;;  %v1661_v43 = vmul.f32 %v2077_v7, %v2077_v7 }
 0x252   : > { %v1689_v29 = vadd.f32 %v1688_v34, %v1658_v39  ;;  %v1993_v3 = vpack.c.bf16 %v1409_v52, %v1406_v55  ;;  %v1621_v58 = vadd.f32 %v1620_v36, %v1409_v52  ;;  %v1659_v15 = vmul.f32 %v1409_v52, %v1409_v52 }
 0x253   : > { %2022 = vst [vmem:[%s2993_s27 + $0x68] sm:$0xff] %v1998_v44  }
 0x254   : > { %2021 = vst [vmem:[%s2993_s27 + $0x60] sm:$0xff] %v1993_v3   ;;  %v1622_v61 = vadd.f32 %v2076_v35, %v1621_v58  ;;  %v1690_v12 = vadd.f32 %v1689_v29, %v1659_v15 }
 0x256   : > { %v1691_v62 = vadd.f32 %v1690_v12, %v1660_v59  ;;  %v1623_v46 = vadd.f32 %v2077_v7, %v1622_v61 }
 0x258   : > { %v1692_v48 = vadd.f32 %v1691_v62, %v1661_v43 }
 0x26b   : > { %v2080_v49 = vpop.f32.mrb[12].mxu1 }
 0x26c   : > { %v1422_v50 = vpop.f32.mrb[13].mxu1  ;;  %v1664_v4 = vmul.f32 %v2080_v49, %v2080_v49 }
 0x26d   : > { %v1624_v25 = vadd.f32 %v1623_v46, %v1422_v50  ;;  %v1662_v2 = vmul.f32 %v1422_v50, %v1422_v50  ;;  %v2081_v6 = vpop.f32.mrb[14].mxu1 }
 0x26e   : > { %v2008_v1 = vpack.c.bf16 %v2081_v6, %v2080_v49  ;;  %v1425_v11 = vpop.f32.mrb[15].mxu1 }
 0x26f   : > { %v1693_v42 = vadd.f32 %v1692_v48, %v1662_v2  ;;  %v2003_v40 = vpack.c.bf16 %v1425_v11, %v1422_v50  ;;  %v1625_v8 = vadd.f32 %v1624_v25, %v1425_v11  ;;  %v1663_v0 = vmul.f32 %v1425_v11, %v1425_v11 }
 0x270   : > { %2024 = vst [vmem:[%s2993_s27 + $0x78] sm:$0xff] %v2008_v1  }
 0x271   : > { %2023 = vst [vmem:[%s2993_s27 + $0x70] sm:$0xff] %v2003_v40   ;;  %v1626_v9 = vadd.f32 %v2080_v49, %v1625_v8  ;;  %v1694_v14 = vadd.f32 %v1693_v42, %v1663_v0 }
 0x272   : > { %2160 = shalt.err (!%p2157_p3)
}
 0x273   : > { %s2161_s17 = scalar_lea.hbm %s3016_s6, 2048  ;;  %s2165_s24 = scalar_lea.hbm %s3097_s2, 4096 }
 0x274   : > { %p2162_p4 = scmp.ne.s32.totalorder %s3016_s6, %s2161_s17  ;;  %p2166_p9 = scmp.lt.u32.totalorder %s3016_s6, %s3097_s2 }
 0x275   : > { %p2167_p10 = scmp.lt.u32.totalorder %s2165_s24, %s2161_s17  ;;  %p2169_p12 = scmp.lt.u32.totalorder %s2161_s17, %s3016_s6 }
 0x276   : > { %p2163_p7 = pnand %p2162_p4, %p2312_p5 }
 0x277   : > { %p2168_p11 = por %p2167_p10, %p2166_p9 }
 0x278   : > { %p2164_p8 = pneg %p2163_p7 }
 0x279   : > { %p2170_p13 = por %p2169_p12, %p2168_p11 }
 0x27b   : > { %p2171_p0 = pnand %p2170_p13, %p2164_p8 }
 0x27d   : > { %2174 = shalt.err (!%p2171_p0)
}
 0x27e   : > { %s2252_s28 = smov 64   ;;  %v1665_v28 = vmul.f32 %v2081_v6, %v2081_v6  ;;  %v1627_v16 = vadd.f32 %v2081_v6, %v1626_v9  ;;  %v1695_v5 = vadd.f32 %v1694_v14, %v1664_v4  ;;  %s1837_s4 = sshll.u32 %s2986_s25, 1  ;;  %vm1703_vm13 = vcmask 1040384  }
 0x27f   : > { %2091 = dma.vmem_to_hbm [thread:$0]  (%p2312_p5), %s3018_s29, 2048, %s3016_s6, %s1707_s7, %s2252_s28, %s2252_s28, %s2244_s30  }
 0x280   : > { %v1628_v10 = vrot.slane %v1627_v16, 4  ;;  %v1696_v37 = vadd.f32 %v1695_v5, %v1665_v28  ;;  %s1894_s5 = sshll.u32 %s2295_s16, 5  ;;  %s174_s30 = scalar_lea.vmem [#allocation5], %s1837_s4 }
 0x281   : > { %s1741_s29 = sshll.u32 %s174_s30, 4  ;;  %s3052_s8 = scalar_lea.hbm %s3098_s3, %s1894_s5  ;;  %s3054_s29 = int_to_ptr.vmem [resolvable:$true] %s1741_s29 }
 0x282   : > { %v1629_v26 = vadd.f32 %v1628_v10, %v1627_v16  ;;  %v1697_v38 = vrot.slane %v1696_v37, 4  ;;  %s1712_s9 = scalar_lea.sflag [#allocation6], %s2986_s25  ;;  %s2175_s10 = scalar_lea.vmem %s3054_s29, 32 }
 0x283   : > { %p2176_p1 = scmp.ne.s32.totalorder %s3054_s29, %s2175_s10  ;;  %s2253_s16 = smov [#allocation5]  }
 0x284   : > { %v1630_v18 = vrot.slane %v1629_v26, 2  ;;  %v1698_v20 = vadd.f32 %v1697_v38, %v1696_v37  ;;  %s2179_s11 = sshll.u32 %s2253_s16, 4  ;;  %s2180_s11 = int_to_ptr.vmem [resolvable:$false] %s2179_s11 }
 0x285   : > { %p2177_p2 = pnand %p2176_p1, %p2312_p5  ;;  %s2181_s17 = scalar_lea.vmem %s2180_s11, 64 }
 0x286   : > { %v1631_v21 = vadd.f32 %v1630_v18, %v1629_v26  ;;  %v1699_v22 = vrot.slane %v1698_v20, 2  ;;  %p2182_p4 = scmp.lt.s32.totalorder %s3054_s29, %s2180_s11  ;;  %p2183_p7 = scmp.lt.s32.totalorder %s2181_s17, %s2175_s10 }
 0x287   : > { %p2178_p3 = pneg %p2177_p2 }
 0x288   : > { %v1632_v45 = vrot.slane %v1631_v21, 1  ;;  %v1700_v53 = vadd.f32 %v1699_v22, %v1698_v20  ;;  %p2184_p8 = por %p2183_p7, %p2182_p4 }
 0x28a   : > { %v1701_v23 = vrot.slane %v1700_v53, 1  ;;  %v1633_v41 = vadd.f32 %v1632_v45, %v1631_v21  ;;  %p2185_p9 = pnand %p2184_p8, %p2178_p3 }
 0x28c   : > { %v1702_v27 = vadd.f32 %v1701_v23, %v1700_v53 }
 0x28e   : > { %v1704_v54 = vsel %vm1703_vm13, %v1633_v41, %v1702_v27 }
 0x28f   : > { %1705 = vst [vmem:[%s174_s30] sm:$0x3] %v1704_v54 }
 0x290   : > { %2188 = shalt.err (!%p2185_p9)
}
 0x291   : > { %s2189_s25 = scalar_lea.hbm %s3052_s8, 32  ;;  %s2193_s24 = scalar_lea.hbm %s3098_s3, 64 }
 0x292   : > { %p2190_p10 = scmp.ne.s32.totalorder %s3052_s8, %s2189_s25  ;;  %p2194_p13 = scmp.lt.u32.totalorder %s3052_s8, %s3098_s3 }
 0x293   : > { %p2195_p0 = scmp.lt.u32.totalorder %s2193_s24, %s2189_s25  ;;  %p2197_p2 = scmp.lt.u32.totalorder %s2189_s25, %s3052_s8 }
 0x294   : > { %p2191_p11 = pnand %p2190_p10, %p2312_p5 }
 0x295   : > { %p2196_p1 = por %p2195_p0, %p2194_p13 }
 0x296   : > { %p2192_p12 = pneg %p2191_p11 }
 0x297   : > { %p2198_p3 = por %p2197_p2, %p2196_p1 }
 0x299   : > { %p2199_p4 = pnand %p2198_p3, %p2192_p12 }
 0x29b   : > { %2202 = shalt.err (!%p2199_p4)
}
 0x29c   : > { %2092 = dma.vmem_to_hbm [thread:$0]  (%p2312_p5), %s3054_s29, 32, %s3052_s8, %s1712_s9  }
 0x29d PF: > { %p2102_p7 = scmp.ge.s32.totalorder %s2241_s15, 2  ;;  %s1753_s28 = sand.u32 1, %s2229_s12  }
 0x29e   : > { %s1754_s4 = scalar_lea.sflag [#allocation4], %s1753_s28 }
 0x29f   : > { %p2096_p8 = pnand %p2102_p7, %p2316_p6 }
 0x2a1   : > { %2220 = dma.done.wait (!%p2096_p8), %s1754_s4, 2048  }
 0x2a2   : > { %2222 = vsyncadd (!%p2096_p8), %s1754_s4, 4294965248  ;;  %s1763_s5 = scalar_lea.sflag [#allocation6], %s1753_s28 }
 0x2a3   : > { %2224 = dma.done.wait (!%p2096_p8), %s1763_s5, 32  }
 0x2a4   : > { %2226 = vsyncadd (!%p2096_p8), %s1763_s5, 4294967264  ;;  %p17_p5 = scmp.ge.s32.totalorder %s2299_s18, 4   ;;  %s3101_s12 = smov %s2233_s13 }
 0x2a5   : > { %s3102_s13 = smov %s2237_s14  ;;  %s3103_s14 = smov %s2310_s21 }
 0x2a6   : > { %s3104_s15 = smov %s2299_s18  ;;  %19 = sbr.rel (!%p17_p5) target bundleno = 5 (0x5), region = 80 }
 0x2ad   :  { %1768 = vsyncpa [#allocation4], 1 }
 0x2ae   :  { %1770 = vsyncpa [#allocation4 + $0x1], 1 }
 0x2af   :  { %1771 = vsyncpa [#allocation6], 1 }
 0x2b0   :  { %1773 = vsyncpa [#allocation6 + $0x1], 1 }

</bundles_post_ra>
